<compile_context>
chip_gen: v7x
topology: tpu7x:2x2x1
jax: 0.10.0
libtpu: 0.0.40
codegen_flags: <defaults>
</compile_context>

<pallas_src>
import jax
import jax.numpy as jnp
import numpy as np
from jax.experimental import pallas as pl
from jax.experimental.pallas import tpu as pltpu

HIDDEN = 64
INPUT_SIZE = 1
OUTPUT_SIZE = 1


def lstm_fc_kernel(x_proj_ref, w_hh_ref, w_fc_ref, b_fc_ref, out_ref):
    """Whole LSTM recurrence + final FC in one kernel invocation.

    x_proj_ref : (S, B, 4H) f32, input projection + combined bias, gate columns
                 pre-permuted to [i, f, o, g].
    w_hh_ref   : (H, 4H) f32 (same gate permutation, right-multiply layout).
    w_fc_ref   : (1, H)  f32 (fc weight row; output_size == 1).
    b_fc_ref   : (1, 1)  f32 in SMEM.
    out_ref    : (B, 1)  f32.
    """
    S, B, G = x_proj_ref.shape
    H = G // 4

    # ---- Hoisted, loop-invariant work --------------------------------------
    w_hh = w_hh_ref[...]          # (H, 4H), kept resident across all steps
    w_fc = w_fc_ref[...]          # (1, H)

    # Lane mask for the [o | g] 128-lane tile: lanes < H -> sigmoid, else tanh.
    lane = jax.lax.broadcasted_iota(jnp.int32, (B, 2 * H), dimension=1)
    og_mask = lane < H

    h = jnp.zeros((B, H), jnp.float32)
    c = jnp.zeros((B, H), jnp.float32)

    # ---- Fully unrolled recurrence (S is small & static) --------------------
    for t in range(S):
        gates = x_proj_ref[t] + jnp.dot(h, w_hh,
                                        preferred_element_type=jnp.float32)
        # Tile-aligned activations (each slab is a whole 128-lane tile).
        t0 = jax.nn.sigmoid(gates[:, :2 * H])          # [i | f]
        t1 = gates[:, 2 * H:]                          # [o | g]
        og = jnp.where(og_mask, jax.nn.sigmoid(t1), jnp.tanh(t1))
        i = t0[:, :H]
        f = t0[:, H:]
        o = og[:, :H]
        g = og[:, H:]
        c = f * c + i * g
        h = o * jnp.tanh(c)

    # ---- Final FC (output_size == 1): VPU multiply + lane reduce ------------
    out_ref[...] = (jnp.sum(h * w_fc, axis=-1, keepdims=True) + b_fc_ref[0, 0])


def _reorder_gates(w):
    """Permute PyTorch gate blocks [i, f, g, o] -> [i, f, o, g] along axis 0."""
    i, f, g, o = jnp.split(w, 4, axis=0)
    return jnp.concatenate([i, f, o, g], axis=0)


def lstm_model_forward(x, params):
    """x: (batch, seq) float32  ->  (batch, output_size) float32."""
    w_ih, w_hh, b_ih, b_hh, w_fc, b_fc = params
    B, S = x.shape
    H = w_hh.shape[1]          # torch w_hh is (4H, H)
    O = w_fc.shape[0]          # torch fc weight is (out, H)
    assert O == 1, "kernel's FC reduce path specializes output_size == 1"

    # Gate-column permutation [i,f,g,o] -> [i,f,o,g].
    w_ih_r = _reorder_gates(w_ih)[:, 0]                          # (4H,)
    w_hh_r = jnp.transpose(_reorder_gates(w_hh))                 # (H, 4H)
    b_r = _reorder_gates((b_ih + b_hh)[:, None])[:, 0]           # (4H,)

    # Hoisted input projection + bias for ALL timesteps, computed in XLA
    # (fuses with the transpose); passed time-major so the kernel loop only
    # does one small matmul + gate math per step.
    x_tm = jnp.transpose(x).astype(jnp.float32)                  # (S, B)
    x_proj = (x_tm[:, :, None] * w_ih_r[None, None, :]
              + b_r[None, None, :])                              # (S, B, 4H)

    w_fc_r = w_fc.astype(jnp.float32)                            # (1, H)
    b_fc_r = b_fc.reshape(1, 1).astype(jnp.float32)              # (1, 1) -> SMEM

    vmem = pl.BlockSpec(memory_space=pltpu.MemorySpace.VMEM)
    smem = pl.BlockSpec(memory_space=pltpu.MemorySpace.SMEM)

    # Grid-less: total footprint ~0.2 MiB, far under the VMEM limit on
    # v5e/v6e (128 MiB) and v7x (64 MiB). If S*B grows to tens of thousands,
    # tile x_proj per step and set vmem_limit_bytes explicitly.
    return pl.pallas_call(
        lstm_fc_kernel,
        out_shape=jax.ShapeDtypeStruct((B, O), jnp.float32),
        in_specs=[vmem, vmem, vmem, smem],
        out_specs=vmem,
    )(x_proj, w_hh_r, w_fc_r, b_fc_r)


def init_params(key, input_size=INPUT_SIZE, hidden=HIDDEN, output_size=OUTPUT_SIZE):
    """Deterministic init mimicking PyTorch's uniform(-1/sqrt(H), 1/sqrt(H))."""
    ks = jax.random.split(key, 6)
    k_lstm = 1.0 / np.sqrt(hidden)
    k_fc = 1.0 / np.sqrt(hidden)
    w_ih = jax.random.uniform(ks[0], (4 * hidden, input_size), jnp.float32, -k_lstm, k_lstm)
    w_hh = jax.random.uniform(ks[1], (4 * hidden, hidden), jnp.float32, -k_lstm, k_lstm)
    b_ih = jax.random.uniform(ks[2], (4 * hidden,), jnp.float32, -k_lstm, k_lstm)
    b_hh = jax.random.uniform(ks[3], (4 * hidden,), jnp.float32, -k_lstm, k_lstm)
    w_fc = jax.random.uniform(ks[4], (output_size, hidden), jnp.float32, -k_fc, k_fc)
    b_fc = jax.random.uniform(ks[5], (output_size,), jnp.float32, -k_fc, k_fc)
    return (w_ih, w_hh, b_ih, b_hh, w_fc, b_fc)


def reference_forward(x, params):
    """Pure-JAX reference reproducing torch.nn.LSTM + Linear semantics
    (original PyTorch gate ordering i, f, g, o — NOT the permuted kernel layout)."""
    w_ih, w_hh, b_ih, b_hh, w_fc, b_fc = params
    B, S = x.shape
    H = w_hh.shape[1]
    h = jnp.zeros((B, H), jnp.float32)
    c = jnp.zeros((B, H), jnp.float32)
    x3 = x[:, :, None]  # (B, S, 1)
    for t in range(S):
        gates = x3[:, t, :] @ w_ih.T + h @ w_hh.T + b_ih + b_hh
        i = jax.nn.sigmoid(gates[:, 0:H])
        f = jax.nn.sigmoid(gates[:, H:2 * H])
        g = jnp.tanh(gates[:, 2 * H:3 * H])
        o = jax.nn.sigmoid(gates[:, 3 * H:4 * H])
        c = f * c + i * g
        h = o * jnp.tanh(c)
    return h @ w_fc.T + b_fc


if __name__ == "__main__":
    key = jax.random.PRNGKey(0)
    k_param, k_x = jax.random.split(key)

    batch, seq = 8, 16
    x = jax.random.normal(k_x, (batch, seq), jnp.float32)
    params = init_params(k_param)

    out = lstm_model_forward(x, params)
    out = jax.block_until_ready(out)

    ref = jax.block_until_ready(reference_forward(x, params))
    assert out.shape == (batch, OUTPUT_SIZE), out.shape
    np.testing.assert_allclose(np.asarray(out), np.asarray(ref), rtol=1e-4, atol=1e-4)

    print("KERNEL_OK")
</pallas_src>

<mosaic_0001>
module attributes {stable_mosaic.version = 11 : i64} {
  func.func @lstm_fc_kernel(%arg0: memref<16x8x256xf32, #tpu.memory_space<vmem>>, %arg1: memref<64x256xf32, #tpu.memory_space<vmem>>, %arg2: memref<1x64xf32, #tpu.memory_space<vmem>>, %arg3: memref<1x1xf32, #tpu.memory_space<smem>>, %arg4: memref<8x1xf32, #tpu.memory_space<vmem>>) attributes {dimension_semantics = [], scalar_prefetch = 0 : i64, scratch_operands = 0 : i64, tpu.core_type = #tpu.core_type<tc>} {
    %c0 = arith.constant 0 : index
    %c0_0 = arith.constant 0 : index
    %0 = vector.load %arg1[%c0, %c0_0] : memref<64x256xf32, #tpu.memory_space<vmem>>, vector<64x256xf32>
    %c0_1 = arith.constant 0 : index
    %c0_2 = arith.constant 0 : index
    %1 = vector.load %arg2[%c0_1, %c0_2] : memref<1x64xf32, #tpu.memory_space<vmem>>, vector<1x64xf32>
    %2 = tpu.iota {dimensions = array<i32: 1>} : vector<8x128xi32>
    %c64_i32 = arith.constant 64 : i32
    %3 = vector.broadcast %c64_i32 : i32 to vector<8x128xi32>
    %4 = arith.cmpi slt, %2, %3 : vector<8x128xi32>
    %cst = arith.constant 0.000000e+00 : f32
    %5 = vector.broadcast %cst : f32 to vector<8x64xf32>
    %cst_3 = arith.constant 0.000000e+00 : f32
    %6 = vector.broadcast %cst_3 : f32 to vector<8x64xf32>
    %c0_4 = arith.constant 0 : index
    %c0_5 = arith.constant 0 : index
    %c0_6 = arith.constant 0 : index
    %7 = vector.load %arg0[%c0_4, %c0_5, %c0_6] : memref<16x8x256xf32, #tpu.memory_space<vmem>>, vector<1x8x256xf32>
    %8 = vector.shape_cast %7 : vector<1x8x256xf32> to vector<8x256xf32>
    %cst_7 = arith.constant dense<0.000000e+00> : vector<8x256xf32>
    %9 = tpu.matmul %5, %0, %cst_7 {dimension_numbers = #tpu.dot_dimension_numbers<[1], [0], [0], [1], [0, 0, 1, 1], [], []>} : vector<8x64xf32>, vector<64x256xf32>, vector<8x256xf32> -> vector<8x256xf32>
    %10 = arith.addf %8, %9 : vector<8x256xf32>
    %11 = vector.extract_strided_slice %10 {offsets = [0, 0], sizes = [8, 128], strides = [1, 1]} : vector<8x256xf32> to vector<8x128xf32>
    %12 = arith.negf %11 : vector<8x128xf32>
    %13 = math.exp %12 : vector<8x128xf32>
    %cst_8 = arith.constant 1.000000e+00 : f32
    %14 = vector.broadcast %cst_8 : f32 to vector<8x128xf32>
    %15 = arith.addf %14, %13 : vector<8x128xf32>
    %16 = arith.divf %14, %15 : vector<8x128xf32>
    %17 = vector.extract_strided_slice %10 {offsets = [0, 128], sizes = [8, 128], strides = [1, 1]} : vector<8x256xf32> to vector<8x128xf32>
    %18 = arith.negf %17 : vector<8x128xf32>
    %19 = math.exp %18 : vector<8x128xf32>
    %cst_9 = arith.constant 1.000000e+00 : f32
    %20 = vector.broadcast %cst_9 : f32 to vector<8x128xf32>
    %21 = arith.addf %20, %19 : vector<8x128xf32>
    %22 = arith.divf %20, %21 : vector<8x128xf32>
    %23 = math.tanh %17 : vector<8x128xf32>
    %24 = arith.select %4, %22, %23 : vector<8x128xi1>, vector<8x128xf32>
    %25 = vector.extract_strided_slice %16 {offsets = [0, 0], sizes = [8, 64], strides = [1, 1]} : vector<8x128xf32> to vector<8x64xf32>
    %26 = vector.extract_strided_slice %16 {offsets = [0, 64], sizes = [8, 64], strides = [1, 1]} : vector<8x128xf32> to vector<8x64xf32>
    %27 = vector.extract_strided_slice %24 {offsets = [0, 0], sizes = [8, 64], strides = [1, 1]} : vector<8x128xf32> to vector<8x64xf32>
    %28 = vector.extract_strided_slice %24 {offsets = [0, 64], sizes = [8, 64], strides = [1, 1]} : vector<8x128xf32> to vector<8x64xf32>
    %29 = arith.mulf %26, %6 : vector<8x64xf32>
    %30 = arith.mulf %25, %28 : vector<8x64xf32>
    %31 = arith.addf %29, %30 : vector<8x64xf32>
    %32 = math.tanh %31 : vector<8x64xf32>
    %33 = arith.mulf %27, %32 : vector<8x64xf32>
    %c1 = arith.constant 1 : index
    %c0_10 = arith.constant 0 : index
    %c0_11 = arith.constant 0 : index
    %34 = vector.load %arg0[%c1, %c0_10, %c0_11] : memref<16x8x256xf32, #tpu.memory_space<vmem>>, vector<1x8x256xf32>
    %35 = vector.shape_cast %34 : vector<1x8x256xf32> to vector<8x256xf32>
    %cst_12 = arith.constant dense<0.000000e+00> : vector<8x256xf32>
    %36 = tpu.matmul %33, %0, %cst_12 {dimension_numbers = #tpu.dot_dimension_numbers<[1], [0], [0], [1], [0, 0, 1, 1], [], []>} : vector<8x64xf32>, vector<64x256xf32>, vector<8x256xf32> -> vector<8x256xf32>
    %37 = arith.addf %35, %36 : vector<8x256xf32>
    %38 = vector.extract_strided_slice %37 {offsets = [0, 0], sizes = [8, 128], strides = [1, 1]} : vector<8x256xf32> to vector<8x128xf32>
    %39 = arith.negf %38 : vector<8x128xf32>
    %40 = math.exp %39 : vector<8x128xf32>
    %cst_13 = arith.constant 1.000000e+00 : f32
    %41 = vector.broadcast %cst_13 : f32 to vector<8x128xf32>
    %42 = arith.addf %41, %40 : vector<8x128xf32>
    %43 = arith.divf %41, %42 : vector<8x128xf32>
    %44 = vector.extract_strided_slice %37 {offsets = [0, 128], sizes = [8, 128], strides = [1, 1]} : vector<8x256xf32> to vector<8x128xf32>
    %45 = arith.negf %44 : vector<8x128xf32>
    %46 = math.exp %45 : vector<8x128xf32>
    %cst_14 = arith.constant 1.000000e+00 : f32
    %47 = vector.broadcast %cst_14 : f32 to vector<8x128xf32>
    %48 = arith.addf %47, %46 : vector<8x128xf32>
    %49 = arith.divf %47, %48 : vector<8x128xf32>
    %50 = math.tanh %44 : vector<8x128xf32>
    %51 = arith.select %4, %49, %50 : vector<8x128xi1>, vector<8x128xf32>
    %52 = vector.extract_strided_slice %43 {offsets = [0, 0], sizes = [8, 64], strides = [1, 1]} : vector<8x128xf32> to vector<8x64xf32>
    %53 = vector.extract_strided_slice %43 {offsets = [0, 64], sizes = [8, 64], strides = [1, 1]} : vector<8x128xf32> to vector<8x64xf32>
    %54 = vector.extract_strided_slice %51 {offsets = [0, 0], sizes = [8, 64], strides = [1, 1]} : vector<8x128xf32> to vector<8x64xf32>
    %55 = vector.extract_strided_slice %51 {offsets = [0, 64], sizes = [8, 64], strides = [1, 1]} : vector<8x128xf32> to vector<8x64xf32>
    %56 = arith.mulf %53, %31 : vector<8x64xf32>
    %57 = arith.mulf %52, %55 : vector<8x64xf32>
    %58 = arith.addf %56, %57 : vector<8x64xf32>
    %59 = math.tanh %58 : vector<8x64xf32>
    %60 = arith.mulf %54, %59 : vector<8x64xf32>
    %c2 = arith.constant 2 : index
    %c0_15 = arith.constant 0 : index
    %c0_16 = arith.constant 0 : index
    %61 = vector.load %arg0[%c2, %c0_15, %c0_16] : memref<16x8x256xf32, #tpu.memory_space<vmem>>, vector<1x8x256xf32>
    %62 = vector.shape_cast %61 : vector<1x8x256xf32> to vector<8x256xf32>
    %cst_17 = arith.constant dense<0.000000e+00> : vector<8x256xf32>
    %63 = tpu.matmul %60, %0, %cst_17 {dimension_numbers = #tpu.dot_dimension_numbers<[1], [0], [0], [1], [0, 0, 1, 1], [], []>} : vector<8x64xf32>, vector<64x256xf32>, vector<8x256xf32> -> vector<8x256xf32>
    %64 = arith.addf %62, %63 : vector<8x256xf32>
    %65 = vector.extract_strided_slice %64 {offsets = [0, 0], sizes = [8, 128], strides = [1, 1]} : vector<8x256xf32> to vector<8x128xf32>
    %66 = arith.negf %65 : vector<8x128xf32>
    %67 = math.exp %66 : vector<8x128xf32>
    %cst_18 = arith.constant 1.000000e+00 : f32
    %68 = vector.broadcast %cst_18 : f32 to vector<8x128xf32>
    %69 = arith.addf %68, %67 : vector<8x128xf32>
    %70 = arith.divf %68, %69 : vector<8x128xf32>
    %71 = vector.extract_strided_slice %64 {offsets = [0, 128], sizes = [8, 128], strides = [1, 1]} : vector<8x256xf32> to vector<8x128xf32>
    %72 = arith.negf %71 : vector<8x128xf32>
    %73 = math.exp %72 : vector<8x128xf32>
    %cst_19 = arith.constant 1.000000e+00 : f32
    %74 = vector.broadcast %cst_19 : f32 to vector<8x128xf32>
    %75 = arith.addf %74, %73 : vector<8x128xf32>
    %76 = arith.divf %74, %75 : vector<8x128xf32>
    %77 = math.tanh %71 : vector<8x128xf32>
    %78 = arith.select %4, %76, %77 : vector<8x128xi1>, vector<8x128xf32>
    %79 = vector.extract_strided_slice %70 {offsets = [0, 0], sizes = [8, 64], strides = [1, 1]} : vector<8x128xf32> to vector<8x64xf32>
    %80 = vector.extract_strided_slice %70 {offsets = [0, 64], sizes = [8, 64], strides = [1, 1]} : vector<8x128xf32> to vector<8x64xf32>
    %81 = vector.extract_strided_slice %78 {offsets = [0, 0], sizes = [8, 64], strides = [1, 1]} : vector<8x128xf32> to vector<8x64xf32>
    %82 = vector.extract_strided_slice %78 {offsets = [0, 64], sizes = [8, 64], strides = [1, 1]} : vector<8x128xf32> to vector<8x64xf32>
    %83 = arith.mulf %80, %58 : vector<8x64xf32>
    %84 = arith.mulf %79, %82 : vector<8x64xf32>
    %85 = arith.addf %83, %84 : vector<8x64xf32>
    %86 = math.tanh %85 : vector<8x64xf32>
    %87 = arith.mulf %81, %86 : vector<8x64xf32>
    %c3 = arith.constant 3 : index
    %c0_20 = arith.constant 0 : index
    %c0_21 = arith.constant 0 : index
    %88 = vector.load %arg0[%c3, %c0_20, %c0_21] : memref<16x8x256xf32, #tpu.memory_space<vmem>>, vector<1x8x256xf32>
    %89 = vector.shape_cast %88 : vector<1x8x256xf32> to vector<8x256xf32>
    %cst_22 = arith.constant dense<0.000000e+00> : vector<8x256xf32>
    %90 = tpu.matmul %87, %0, %cst_22 {dimension_numbers = #tpu.dot_dimension_numbers<[1], [0], [0], [1], [0, 0, 1, 1], [], []>} : vector<8x64xf32>, vector<64x256xf32>, vector<8x256xf32> -> vector<8x256xf32>
    %91 = arith.addf %89, %90 : vector<8x256xf32>
    %92 = vector.extract_strided_slice %91 {offsets = [0, 0], sizes = [8, 128], strides = [1, 1]} : vector<8x256xf32> to vector<8x128xf32>
    %93 = arith.negf %92 : vector<8x128xf32>
    %94 = math.exp %93 : vector<8x128xf32>
    %cst_23 = arith.constant 1.000000e+00 : f32
    %95 = vector.broadcast %cst_23 : f32 to vector<8x128xf32>
    %96 = arith.addf %95, %94 : vector<8x128xf32>
    %97 = arith.divf %95, %96 : vector<8x128xf32>
    %98 = vector.extract_strided_slice %91 {offsets = [0, 128], sizes = [8, 128], strides = [1, 1]} : vector<8x256xf32> to vector<8x128xf32>
    %99 = arith.negf %98 : vector<8x128xf32>
    %100 = math.exp %99 : vector<8x128xf32>
    %cst_24 = arith.constant 1.000000e+00 : f32
    %101 = vector.broadcast %cst_24 : f32 to vector<8x128xf32>
    %102 = arith.addf %101, %100 : vector<8x128xf32>
    %103 = arith.divf %101, %102 : vector<8x128xf32>
    %104 = math.tanh %98 : vector<8x128xf32>
    %105 = arith.select %4, %103, %104 : vector<8x128xi1>, vector<8x128xf32>
    %106 = vector.extract_strided_slice %97 {offsets = [0, 0], sizes = [8, 64], strides = [1, 1]} : vector<8x128xf32> to vector<8x64xf32>
    %107 = vector.extract_strided_slice %97 {offsets = [0, 64], sizes = [8, 64], strides = [1, 1]} : vector<8x128xf32> to vector<8x64xf32>
    %108 = vector.extract_strided_slice %105 {offsets = [0, 0], sizes = [8, 64], strides = [1, 1]} : vector<8x128xf32> to vector<8x64xf32>
    %109 = vector.extract_strided_slice %105 {offsets = [0, 64], sizes = [8, 64], strides = [1, 1]} : vector<8x128xf32> to vector<8x64xf32>
    %110 = arith.mulf %107, %85 : vector<8x64xf32>
    %111 = arith.mulf %106, %109 : vector<8x64xf32>
    %112 = arith.addf %110, %111 : vector<8x64xf32>
    %113 = math.tanh %112 : vector<8x64xf32>
    %114 = arith.mulf %108, %113 : vector<8x64xf32>
    %c4 = arith.constant 4 : index
    %c0_25 = arith.constant 0 : index
    %c0_26 = arith.constant 0 : index
    %115 = vector.load %arg0[%c4, %c0_25, %c0_26] : memref<16x8x256xf32, #tpu.memory_space<vmem>>, vector<1x8x256xf32>
    %116 = vector.shape_cast %115 : vector<1x8x256xf32> to vector<8x256xf32>
    %cst_27 = arith.constant dense<0.000000e+00> : vector<8x256xf32>
    %117 = tpu.matmul %114, %0, %cst_27 {dimension_numbers = #tpu.dot_dimension_numbers<[1], [0], [0], [1], [0, 0, 1, 1], [], []>} : vector<8x64xf32>, vector<64x256xf32>, vector<8x256xf32> -> vector<8x256xf32>
    %118 = arith.addf %116, %117 : vector<8x256xf32>
    %119 = vector.extract_strided_slice %118 {offsets = [0, 0], sizes = [8, 128], strides = [1, 1]} : vector<8x256xf32> to vector<8x128xf32>
    %120 = arith.negf %119 : vector<8x128xf32>
    %121 = math.exp %120 : vector<8x128xf32>
    %cst_28 = arith.constant 1.000000e+00 : f32
    %122 = vector.broadcast %cst_28 : f32 to vector<8x128xf32>
    %123 = arith.addf %122, %121 : vector<8x128xf32>
    %124 = arith.divf %122, %123 : vector<8x128xf32>
    %125 = vector.extract_strided_slice %118 {offsets = [0, 128], sizes = [8, 128], strides = [1, 1]} : vector<8x256xf32> to vector<8x128xf32>
    %126 = arith.negf %125 : vector<8x128xf32>
    %127 = math.exp %126 : vector<8x128xf32>
    %cst_29 = arith.constant 1.000000e+00 : f32
    %128 = vector.broadcast %cst_29 : f32 to vector<8x128xf32>
    %129 = arith.addf %128, %127 : vector<8x128xf32>
    %130 = arith.divf %128, %129 : vector<8x128xf32>
    %131 = math.tanh %125 : vector<8x128xf32>
    %132 = arith.select %4, %130, %131 : vector<8x128xi1>, vector<8x128xf32>
    %133 = vector.extract_strided_slice %124 {offsets = [0, 0], sizes = [8, 64], strides = [1, 1]} : vector<8x128xf32> to vector<8x64xf32>
    %134 = vector.extract_strided_slice %124 {offsets = [0, 64], sizes = [8, 64], strides = [1, 1]} : vector<8x128xf32> to vector<8x64xf32>
    %135 = vector.extract_strided_slice %132 {offsets = [0, 0], sizes = [8, 64], strides = [1, 1]} : vector<8x128xf32> to vector<8x64xf32>
    %136 = vector.extract_strided_slice %132 {offsets = [0, 64], sizes = [8, 64], strides = [1, 1]} : vector<8x128xf32> to vector<8x64xf32>
    %137 = arith.mulf %134, %112 : vector<8x64xf32>
    %138 = arith.mulf %133, %136 : vector<8x64xf32>
    %139 = arith.addf %137, %138 : vector<8x64xf32>
    %140 = math.tanh %139 : vector<8x64xf32>
    %141 = arith.mulf %135, %140 : vector<8x64xf32>
    %c5 = arith.constant 5 : index
    %c0_30 = arith.constant 0 : index
    %c0_31 = arith.constant 0 : index
    %142 = vector.load %arg0[%c5, %c0_30, %c0_31] : memref<16x8x256xf32, #tpu.memory_space<vmem>>, vector<1x8x256xf32>
    %143 = vector.shape_cast %142 : vector<1x8x256xf32> to vector<8x256xf32>
    %cst_32 = arith.constant dense<0.000000e+00> : vector<8x256xf32>
    %144 = tpu.matmul %141, %0, %cst_32 {dimension_numbers = #tpu.dot_dimension_numbers<[1], [0], [0], [1], [0, 0, 1, 1], [], []>} : vector<8x64xf32>, vector<64x256xf32>, vector<8x256xf32> -> vector<8x256xf32>
    %145 = arith.addf %143, %144 : vector<8x256xf32>
    %146 = vector.extract_strided_slice %145 {offsets = [0, 0], sizes = [8, 128], strides = [1, 1]} : vector<8x256xf32> to vector<8x128xf32>
    %147 = arith.negf %146 : vector<8x128xf32>
    %148 = math.exp %147 : vector<8x128xf32>
    %cst_33 = arith.constant 1.000000e+00 : f32
    %149 = vector.broadcast %cst_33 : f32 to vector<8x128xf32>
    %150 = arith.addf %149, %148 : vector<8x128xf32>
    %151 = arith.divf %149, %150 : vector<8x128xf32>
    %152 = vector.extract_strided_slice %145 {offsets = [0, 128], sizes = [8, 128], strides = [1, 1]} : vector<8x256xf32> to vector<8x128xf32>
    %153 = arith.negf %152 : vector<8x128xf32>
    %154 = math.exp %153 : vector<8x128xf32>
    %cst_34 = arith.constant 1.000000e+00 : f32
    %155 = vector.broadcast %cst_34 : f32 to vector<8x128xf32>
    %156 = arith.addf %155, %154 : vector<8x128xf32>
    %157 = arith.divf %155, %156 : vector<8x128xf32>
    %158 = math.tanh %152 : vector<8x128xf32>
    %159 = arith.select %4, %157, %158 : vector<8x128xi1>, vector<8x128xf32>
    %160 = vector.extract_strided_slice %151 {offsets = [0, 0], sizes = [8, 64], strides = [1, 1]} : vector<8x128xf32> to vector<8x64xf32>
    %161 = vector.extract_strided_slice %151 {offsets = [0, 64], sizes = [8, 64], strides = [1, 1]} : vector<8x128xf32> to vector<8x64xf32>
    %162 = vector.extract_strided_slice %159 {offsets = [0, 0], sizes = [8, 64], strides = [1, 1]} : vector<8x128xf32> to vector<8x64xf32>
    %163 = vector.extract_strided_slice %159 {offsets = [0, 64], sizes = [8, 64], strides = [1, 1]} : vector<8x128xf32> to vector<8x64xf32>
    %164 = arith.mulf %161, %139 : vector<8x64xf32>
    %165 = arith.mulf %160, %163 : vector<8x64xf32>
    %166 = arith.addf %164, %165 : vector<8x64xf32>
    %167 = math.tanh %166 : vector<8x64xf32>
    %168 = arith.mulf %162, %167 : vector<8x64xf32>
    %c6 = arith.constant 6 : index
    %c0_35 = arith.constant 0 : index
    %c0_36 = arith.constant 0 : index
    %169 = vector.load %arg0[%c6, %c0_35, %c0_36] : memref<16x8x256xf32, #tpu.memory_space<vmem>>, vector<1x8x256xf32>
    %170 = vector.shape_cast %169 : vector<1x8x256xf32> to vector<8x256xf32>
    %cst_37 = arith.constant dense<0.000000e+00> : vector<8x256xf32>
    %171 = tpu.matmul %168, %0, %cst_37 {dimension_numbers = #tpu.dot_dimension_numbers<[1], [0], [0], [1], [0, 0, 1, 1], [], []>} : vector<8x64xf32>, vector<64x256xf32>, vector<8x256xf32> -> vector<8x256xf32>
    %172 = arith.addf %170, %171 : vector<8x256xf32>
    %173 = vector.extract_strided_slice %172 {offsets = [0, 0], sizes = [8, 128], strides = [1, 1]} : vector<8x256xf32> to vector<8x128xf32>
    %174 = arith.negf %173 : vector<8x128xf32>
    %175 = math.exp %174 : vector<8x128xf32>
    %cst_38 = arith.constant 1.000000e+00 : f32
    %176 = vector.broadcast %cst_38 : f32 to vector<8x128xf32>
    %177 = arith.addf %176, %175 : vector<8x128xf32>
    %178 = arith.divf %176, %177 : vector<8x128xf32>
    %179 = vector.extract_strided_slice %172 {offsets = [0, 128], sizes = [8, 128], strides = [1, 1]} : vector<8x256xf32> to vector<8x128xf32>
    %180 = arith.negf %179 : vector<8x128xf32>
    %181 = math.exp %180 : vector<8x128xf32>
    %cst_39 = arith.constant 1.000000e+00 : f32
    %182 = vector.broadcast %cst_39 : f32 to vector<8x128xf32>
    %183 = arith.addf %182, %181 : vector<8x128xf32>
    %184 = arith.divf %182, %183 : vector<8x128xf32>
    %185 = math.tanh %179 : vector<8x128xf32>
    %186 = arith.select %4, %184, %185 : vector<8x128xi1>, vector<8x128xf32>
    %187 = vector.extract_strided_slice %178 {offsets = [0, 0], sizes = [8, 64], strides = [1, 1]} : vector<8x128xf32> to vector<8x64xf32>
    %188 = vector.extract_strided_slice %178 {offsets = [0, 64], sizes = [8, 64], strides = [1, 1]} : vector<8x128xf32> to vector<8x64xf32>
    %189 = vector.extract_strided_slice %186 {offsets = [0, 0], sizes = [8, 64], strides = [1, 1]} : vector<8x128xf32> to vector<8x64xf32>
    %190 = vector.extract_strided_slice %186 {offsets = [0, 64], sizes = [8, 64], strides = [1, 1]} : vector<8x128xf32> to vector<8x64xf32>
    %191 = arith.mulf %188, %166 : vector<8x64xf32>
    %192 = arith.mulf %187, %190 : vector<8x64xf32>
    %193 = arith.addf %191, %192 : vector<8x64xf32>
    %194 = math.tanh %193 : vector<8x64xf32>
    %195 = arith.mulf %189, %194 : vector<8x64xf32>
    %c7 = arith.constant 7 : index
    %c0_40 = arith.constant 0 : index
    %c0_41 = arith.constant 0 : index
    %196 = vector.load %arg0[%c7, %c0_40, %c0_41] : memref<16x8x256xf32, #tpu.memory_space<vmem>>, vector<1x8x256xf32>
    %197 = vector.shape_cast %196 : vector<1x8x256xf32> to vector<8x256xf32>
    %cst_42 = arith.constant dense<0.000000e+00> : vector<8x256xf32>
    %198 = tpu.matmul %195, %0, %cst_42 {dimension_numbers = #tpu.dot_dimension_numbers<[1], [0], [0], [1], [0, 0, 1, 1], [], []>} : vector<8x64xf32>, vector<64x256xf32>, vector<8x256xf32> -> vector<8x256xf32>
    %199 = arith.addf %197, %198 : vector<8x256xf32>
    %200 = vector.extract_strided_slice %199 {offsets = [0, 0], sizes = [8, 128], strides = [1, 1]} : vector<8x256xf32> to vector<8x128xf32>
    %201 = arith.negf %200 : vector<8x128xf32>
    %202 = math.exp %201 : vector<8x128xf32>
    %cst_43 = arith.constant 1.000000e+00 : f32
    %203 = vector.broadcast %cst_43 : f32 to vector<8x128xf32>
    %204 = arith.addf %203, %202 : vector<8x128xf32>
    %205 = arith.divf %203, %204 : vector<8x128xf32>
    %206 = vector.extract_strided_slice %199 {offsets = [0, 128], sizes = [8, 128], strides = [1, 1]} : vector<8x256xf32> to vector<8x128xf32>
    %207 = arith.negf %206 : vector<8x128xf32>
    %208 = math.exp %207 : vector<8x128xf32>
    %cst_44 = arith.constant 1.000000e+00 : f32
    %209 = vector.broadcast %cst_44 : f32 to vector<8x128xf32>
    %210 = arith.addf %209, %208 : vector<8x128xf32>
    %211 = arith.divf %209, %210 : vector<8x128xf32>
    %212 = math.tanh %206 : vector<8x128xf32>
    %213 = arith.select %4, %211, %212 : vector<8x128xi1>, vector<8x128xf32>
    %214 = vector.extract_strided_slice %205 {offsets = [0, 0], sizes = [8, 64], strides = [1, 1]} : vector<8x128xf32> to vector<8x64xf32>
    %215 = vector.extract_strided_slice %205 {offsets = [0, 64], sizes = [8, 64], strides = [1, 1]} : vector<8x128xf32> to vector<8x64xf32>
    %216 = vector.extract_strided_slice %213 {offsets = [0, 0], sizes = [8, 64], strides = [1, 1]} : vector<8x128xf32> to vector<8x64xf32>
    %217 = vector.extract_strided_slice %213 {offsets = [0, 64], sizes = [8, 64], strides = [1, 1]} : vector<8x128xf32> to vector<8x64xf32>
    %218 = arith.mulf %215, %193 : vector<8x64xf32>
    %219 = arith.mulf %214, %217 : vector<8x64xf32>
    %220 = arith.addf %218, %219 : vector<8x64xf32>
    %221 = math.tanh %220 : vector<8x64xf32>
    %222 = arith.mulf %216, %221 : vector<8x64xf32>
    %c8 = arith.constant 8 : index
    %c0_45 = arith.constant 0 : index
    %c0_46 = arith.constant 0 : index
    %223 = vector.load %arg0[%c8, %c0_45, %c0_46] : memref<16x8x256xf32, #tpu.memory_space<vmem>>, vector<1x8x256xf32>
    %224 = vector.shape_cast %223 : vector<1x8x256xf32> to vector<8x256xf32>
    %cst_47 = arith.constant dense<0.000000e+00> : vector<8x256xf32>
    %225 = tpu.matmul %222, %0, %cst_47 {dimension_numbers = #tpu.dot_dimension_numbers<[1], [0], [0], [1], [0, 0, 1, 1], [], []>} : vector<8x64xf32>, vector<64x256xf32>, vector<8x256xf32> -> vector<8x256xf32>
    %226 = arith.addf %224, %225 : vector<8x256xf32>
    %227 = vector.extract_strided_slice %226 {offsets = [0, 0], sizes = [8, 128], strides = [1, 1]} : vector<8x256xf32> to vector<8x128xf32>
    %228 = arith.negf %227 : vector<8x128xf32>
    %229 = math.exp %228 : vector<8x128xf32>
    %cst_48 = arith.constant 1.000000e+00 : f32
    %230 = vector.broadcast %cst_48 : f32 to vector<8x128xf32>
    %231 = arith.addf %230, %229 : vector<8x128xf32>
    %232 = arith.divf %230, %231 : vector<8x128xf32>
    %233 = vector.extract_strided_slice %226 {offsets = [0, 128], sizes = [8, 128], strides = [1, 1]} : vector<8x256xf32> to vector<8x128xf32>
    %234 = arith.negf %233 : vector<8x128xf32>
    %235 = math.exp %234 : vector<8x128xf32>
    %cst_49 = arith.constant 1.000000e+00 : f32
    %236 = vector.broadcast %cst_49 : f32 to vector<8x128xf32>
    %237 = arith.addf %236, %235 : vector<8x128xf32>
    %238 = arith.divf %236, %237 : vector<8x128xf32>
    %239 = math.tanh %233 : vector<8x128xf32>
    %240 = arith.select %4, %238, %239 : vector<8x128xi1>, vector<8x128xf32>
    %241 = vector.extract_strided_slice %232 {offsets = [0, 0], sizes = [8, 64], strides = [1, 1]} : vector<8x128xf32> to vector<8x64xf32>
    %242 = vector.extract_strided_slice %232 {offsets = [0, 64], sizes = [8, 64], strides = [1, 1]} : vector<8x128xf32> to vector<8x64xf32>
    %243 = vector.extract_strided_slice %240 {offsets = [0, 0], sizes = [8, 64], strides = [1, 1]} : vector<8x128xf32> to vector<8x64xf32>
    %244 = vector.extract_strided_slice %240 {offsets = [0, 64], sizes = [8, 64], strides = [1, 1]} : vector<8x128xf32> to vector<8x64xf32>
    %245 = arith.mulf %242, %220 : vector<8x64xf32>
    %246 = arith.mulf %241, %244 : vector<8x64xf32>
    %247 = arith.addf %245, %246 : vector<8x64xf32>
    %248 = math.tanh %247 : vector<8x64xf32>
    %249 = arith.mulf %243, %248 : vector<8x64xf32>
    %c9 = arith.constant 9 : index
    %c0_50 = arith.constant 0 : index
    %c0_51 = arith.constant 0 : index
    %250 = vector.load %arg0[%c9, %c0_50, %c0_51] : memref<16x8x256xf32, #tpu.memory_space<vmem>>, vector<1x8x256xf32>
    %251 = vector.shape_cast %250 : vector<1x8x256xf32> to vector<8x256xf32>
    %cst_52 = arith.constant dense<0.000000e+00> : vector<8x256xf32>
    %252 = tpu.matmul %249, %0, %cst_52 {dimension_numbers = #tpu.dot_dimension_numbers<[1], [0], [0], [1], [0, 0, 1, 1], [], []>} : vector<8x64xf32>, vector<64x256xf32>, vector<8x256xf32> -> vector<8x256xf32>
    %253 = arith.addf %251, %252 : vector<8x256xf32>
    %254 = vector.extract_strided_slice %253 {offsets = [0, 0], sizes = [8, 128], strides = [1, 1]} : vector<8x256xf32> to vector<8x128xf32>
    %255 = arith.negf %254 : vector<8x128xf32>
    %256 = math.exp %255 : vector<8x128xf32>
    %cst_53 = arith.constant 1.000000e+00 : f32
    %257 = vector.broadcast %cst_53 : f32 to vector<8x128xf32>
    %258 = arith.addf %257, %256 : vector<8x128xf32>
    %259 = arith.divf %257, %258 : vector<8x128xf32>
    %260 = vector.extract_strided_slice %253 {offsets = [0, 128], sizes = [8, 128], strides = [1, 1]} : vector<8x256xf32> to vector<8x128xf32>
    %261 = arith.negf %260 : vector<8x128xf32>
    %262 = math.exp %261 : vector<8x128xf32>
    %cst_54 = arith.constant 1.000000e+00 : f32
    %263 = vector.broadcast %cst_54 : f32 to vector<8x128xf32>
    %264 = arith.addf %263, %262 : vector<8x128xf32>
    %265 = arith.divf %263, %264 : vector<8x128xf32>
    %266 = math.tanh %260 : vector<8x128xf32>
    %267 = arith.select %4, %265, %266 : vector<8x128xi1>, vector<8x128xf32>
    %268 = vector.extract_strided_slice %259 {offsets = [0, 0], sizes = [8, 64], strides = [1, 1]} : vector<8x128xf32> to vector<8x64xf32>
    %269 = vector.extract_strided_slice %259 {offsets = [0, 64], sizes = [8, 64], strides = [1, 1]} : vector<8x128xf32> to vector<8x64xf32>
    %270 = vector.extract_strided_slice %267 {offsets = [0, 0], sizes = [8, 64], strides = [1, 1]} : vector<8x128xf32> to vector<8x64xf32>
    %271 = vector.extract_strided_slice %267 {offsets = [0, 64], sizes = [8, 64], strides = [1, 1]} : vector<8x128xf32> to vector<8x64xf32>
    %272 = arith.mulf %269, %247 : vector<8x64xf32>
    %273 = arith.mulf %268, %271 : vector<8x64xf32>
    %274 = arith.addf %272, %273 : vector<8x64xf32>
    %275 = math.tanh %274 : vector<8x64xf32>
    %276 = arith.mulf %270, %275 : vector<8x64xf32>
    %c10 = arith.constant 10 : index
    %c0_55 = arith.constant 0 : index
    %c0_56 = arith.constant 0 : index
    %277 = vector.load %arg0[%c10, %c0_55, %c0_56] : memref<16x8x256xf32, #tpu.memory_space<vmem>>, vector<1x8x256xf32>
    %278 = vector.shape_cast %277 : vector<1x8x256xf32> to vector<8x256xf32>
    %cst_57 = arith.constant dense<0.000000e+00> : vector<8x256xf32>
    %279 = tpu.matmul %276, %0, %cst_57 {dimension_numbers = #tpu.dot_dimension_numbers<[1], [0], [0], [1], [0, 0, 1, 1], [], []>} : vector<8x64xf32>, vector<64x256xf32>, vector<8x256xf32> -> vector<8x256xf32>
    %280 = arith.addf %278, %279 : vector<8x256xf32>
    %281 = vector.extract_strided_slice %280 {offsets = [0, 0], sizes = [8, 128], strides = [1, 1]} : vector<8x256xf32> to vector<8x128xf32>
    %282 = arith.negf %281 : vector<8x128xf32>
    %283 = math.exp %282 : vector<8x128xf32>
    %cst_58 = arith.constant 1.000000e+00 : f32
    %284 = vector.broadcast %cst_58 : f32 to vector<8x128xf32>
    %285 = arith.addf %284, %283 : vector<8x128xf32>
    %286 = arith.divf %284, %285 : vector<8x128xf32>
    %287 = vector.extract_strided_slice %280 {offsets = [0, 128], sizes = [8, 128], strides = [1, 1]} : vector<8x256xf32> to vector<8x128xf32>
    %288 = arith.negf %287 : vector<8x128xf32>
    %289 = math.exp %288 : vector<8x128xf32>
    %cst_59 = arith.constant 1.000000e+00 : f32
    %290 = vector.broadcast %cst_59 : f32 to vector<8x128xf32>
    %291 = arith.addf %290, %289 : vector<8x128xf32>
    %292 = arith.divf %290, %291 : vector<8x128xf32>
    %293 = math.tanh %287 : vector<8x128xf32>
    %294 = arith.select %4, %292, %293 : vector<8x128xi1>, vector<8x128xf32>
    %295 = vector.extract_strided_slice %286 {offsets = [0, 0], sizes = [8, 64], strides = [1, 1]} : vector<8x128xf32> to vector<8x64xf32>
    %296 = vector.extract_strided_slice %286 {offsets = [0, 64], sizes = [8, 64], strides = [1, 1]} : vector<8x128xf32> to vector<8x64xf32>
    %297 = vector.extract_strided_slice %294 {offsets = [0, 0], sizes = [8, 64], strides = [1, 1]} : vector<8x128xf32> to vector<8x64xf32>
    %298 = vector.extract_strided_slice %294 {offsets = [0, 64], sizes = [8, 64], strides = [1, 1]} : vector<8x128xf32> to vector<8x64xf32>
    %299 = arith.mulf %296, %274 : vector<8x64xf32>
    %300 = arith.mulf %295, %298 : vector<8x64xf32>
    %301 = arith.addf %299, %300 : vector<8x64xf32>
    %302 = math.tanh %301 : vector<8x64xf32>
    %303 = arith.mulf %297, %302 : vector<8x64xf32>
    %c11 = arith.constant 11 : index
    %c0_60 = arith.constant 0 : index
    %c0_61 = arith.constant 0 : index
    %304 = vector.load %arg0[%c11, %c0_60, %c0_61] : memref<16x8x256xf32, #tpu.memory_space<vmem>>, vector<1x8x256xf32>
    %305 = vector.shape_cast %304 : vector<1x8x256xf32> to vector<8x256xf32>
    %cst_62 = arith.constant dense<0.000000e+00> : vector<8x256xf32>
    %306 = tpu.matmul %303, %0, %cst_62 {dimension_numbers = #tpu.dot_dimension_numbers<[1], [0], [0], [1], [0, 0, 1, 1], [], []>} : vector<8x64xf32>, vector<64x256xf32>, vector<8x256xf32> -> vector<8x256xf32>
    %307 = arith.addf %305, %306 : vector<8x256xf32>
    %308 = vector.extract_strided_slice %307 {offsets = [0, 0], sizes = [8, 128], strides = [1, 1]} : vector<8x256xf32> to vector<8x128xf32>
    %309 = arith.negf %308 : vector<8x128xf32>
    %310 = math.exp %309 : vector<8x128xf32>
    %cst_63 = arith.constant 1.000000e+00 : f32
    %311 = vector.broadcast %cst_63 : f32 to vector<8x128xf32>
    %312 = arith.addf %311, %310 : vector<8x128xf32>
    %313 = arith.divf %311, %312 : vector<8x128xf32>
    %314 = vector.extract_strided_slice %307 {offsets = [0, 128], sizes = [8, 128], strides = [1, 1]} : vector<8x256xf32> to vector<8x128xf32>
    %315 = arith.negf %314 : vector<8x128xf32>
    %316 = math.exp %315 : vector<8x128xf32>
    %cst_64 = arith.constant 1.000000e+00 : f32
    %317 = vector.broadcast %cst_64 : f32 to vector<8x128xf32>
    %318 = arith.addf %317, %316 : vector<8x128xf32>
    %319 = arith.divf %317, %318 : vector<8x128xf32>
    %320 = math.tanh %314 : vector<8x128xf32>
    %321 = arith.select %4, %319, %320 : vector<8x128xi1>, vector<8x128xf32>
    %322 = vector.extract_strided_slice %313 {offsets = [0, 0], sizes = [8, 64], strides = [1, 1]} : vector<8x128xf32> to vector<8x64xf32>
    %323 = vector.extract_strided_slice %313 {offsets = [0, 64], sizes = [8, 64], strides = [1, 1]} : vector<8x128xf32> to vector<8x64xf32>
    %324 = vector.extract_strided_slice %321 {offsets = [0, 0], sizes = [8, 64], strides = [1, 1]} : vector<8x128xf32> to vector<8x64xf32>
    %325 = vector.extract_strided_slice %321 {offsets = [0, 64], sizes = [8, 64], strides = [1, 1]} : vector<8x128xf32> to vector<8x64xf32>
    %326 = arith.mulf %323, %301 : vector<8x64xf32>
    %327 = arith.mulf %322, %325 : vector<8x64xf32>
    %328 = arith.addf %326, %327 : vector<8x64xf32>
    %329 = math.tanh %328 : vector<8x64xf32>
    %330 = arith.mulf %324, %329 : vector<8x64xf32>
    %c12 = arith.constant 12 : index
    %c0_65 = arith.constant 0 : index
    %c0_66 = arith.constant 0 : index
    %331 = vector.load %arg0[%c12, %c0_65, %c0_66] : memref<16x8x256xf32, #tpu.memory_space<vmem>>, vector<1x8x256xf32>
    %332 = vector.shape_cast %331 : vector<1x8x256xf32> to vector<8x256xf32>
    %cst_67 = arith.constant dense<0.000000e+00> : vector<8x256xf32>
    %333 = tpu.matmul %330, %0, %cst_67 {dimension_numbers = #tpu.dot_dimension_numbers<[1], [0], [0], [1], [0, 0, 1, 1], [], []>} : vector<8x64xf32>, vector<64x256xf32>, vector<8x256xf32> -> vector<8x256xf32>
    %334 = arith.addf %332, %333 : vector<8x256xf32>
    %335 = vector.extract_strided_slice %334 {offsets = [0, 0], sizes = [8, 128], strides = [1, 1]} : vector<8x256xf32> to vector<8x128xf32>
    %336 = arith.negf %335 : vector<8x128xf32>
    %337 = math.exp %336 : vector<8x128xf32>
    %cst_68 = arith.constant 1.000000e+00 : f32
    %338 = vector.broadcast %cst_68 : f32 to vector<8x128xf32>
    %339 = arith.addf %338, %337 : vector<8x128xf32>
    %340 = arith.divf %338, %339 : vector<8x128xf32>
    %341 = vector.extract_strided_slice %334 {offsets = [0, 128], sizes = [8, 128], strides = [1, 1]} : vector<8x256xf32> to vector<8x128xf32>
    %342 = arith.negf %341 : vector<8x128xf32>
    %343 = math.exp %342 : vector<8x128xf32>
    %cst_69 = arith.constant 1.000000e+00 : f32
    %344 = vector.broadcast %cst_69 : f32 to vector<8x128xf32>
    %345 = arith.addf %344, %343 : vector<8x128xf32>
    %346 = arith.divf %344, %345 : vector<8x128xf32>
    %347 = math.tanh %341 : vector<8x128xf32>
    %348 = arith.select %4, %346, %347 : vector<8x128xi1>, vector<8x128xf32>
    %349 = vector.extract_strided_slice %340 {offsets = [0, 0], sizes = [8, 64], strides = [1, 1]} : vector<8x128xf32> to vector<8x64xf32>
    %350 = vector.extract_strided_slice %340 {offsets = [0, 64], sizes = [8, 64], strides = [1, 1]} : vector<8x128xf32> to vector<8x64xf32>
    %351 = vector.extract_strided_slice %348 {offsets = [0, 0], sizes = [8, 64], strides = [1, 1]} : vector<8x128xf32> to vector<8x64xf32>
    %352 = vector.extract_strided_slice %348 {offsets = [0, 64], sizes = [8, 64], strides = [1, 1]} : vector<8x128xf32> to vector<8x64xf32>
    %353 = arith.mulf %350, %328 : vector<8x64xf32>
    %354 = arith.mulf %349, %352 : vector<8x64xf32>
    %355 = arith.addf %353, %354 : vector<8x64xf32>
    %356 = math.tanh %355 : vector<8x64xf32>
    %357 = arith.mulf %351, %356 : vector<8x64xf32>
    %c13 = arith.constant 13 : index
    %c0_70 = arith.constant 0 : index
    %c0_71 = arith.constant 0 : index
    %358 = vector.load %arg0[%c13, %c0_70, %c0_71] : memref<16x8x256xf32, #tpu.memory_space<vmem>>, vector<1x8x256xf32>
    %359 = vector.shape_cast %358 : vector<1x8x256xf32> to vector<8x256xf32>
    %cst_72 = arith.constant dense<0.000000e+00> : vector<8x256xf32>
    %360 = tpu.matmul %357, %0, %cst_72 {dimension_numbers = #tpu.dot_dimension_numbers<[1], [0], [0], [1], [0, 0, 1, 1], [], []>} : vector<8x64xf32>, vector<64x256xf32>, vector<8x256xf32> -> vector<8x256xf32>
    %361 = arith.addf %359, %360 : vector<8x256xf32>
    %362 = vector.extract_strided_slice %361 {offsets = [0, 0], sizes = [8, 128], strides = [1, 1]} : vector<8x256xf32> to vector<8x128xf32>
    %363 = arith.negf %362 : vector<8x128xf32>
    %364 = math.exp %363 : vector<8x128xf32>
    %cst_73 = arith.constant 1.000000e+00 : f32
    %365 = vector.broadcast %cst_73 : f32 to vector<8x128xf32>
    %366 = arith.addf %365, %364 : vector<8x128xf32>
    %367 = arith.divf %365, %366 : vector<8x128xf32>
    %368 = vector.extract_strided_slice %361 {offsets = [0, 128], sizes = [8, 128], strides = [1, 1]} : vector<8x256xf32> to vector<8x128xf32>
    %369 = arith.negf %368 : vector<8x128xf32>
    %370 = math.exp %369 : vector<8x128xf32>
    %cst_74 = arith.constant 1.000000e+00 : f32
    %371 = vector.broadcast %cst_74 : f32 to vector<8x128xf32>
    %372 = arith.addf %371, %370 : vector<8x128xf32>
    %373 = arith.divf %371, %372 : vector<8x128xf32>
    %374 = math.tanh %368 : vector<8x128xf32>
    %375 = arith.select %4, %373, %374 : vector<8x128xi1>, vector<8x128xf32>
    %376 = vector.extract_strided_slice %367 {offsets = [0, 0], sizes = [8, 64], strides = [1, 1]} : vector<8x128xf32> to vector<8x64xf32>
    %377 = vector.extract_strided_slice %367 {offsets = [0, 64], sizes = [8, 64], strides = [1, 1]} : vector<8x128xf32> to vector<8x64xf32>
    %378 = vector.extract_strided_slice %375 {offsets = [0, 0], sizes = [8, 64], strides = [1, 1]} : vector<8x128xf32> to vector<8x64xf32>
    %379 = vector.extract_strided_slice %375 {offsets = [0, 64], sizes = [8, 64], strides = [1, 1]} : vector<8x128xf32> to vector<8x64xf32>
    %380 = arith.mulf %377, %355 : vector<8x64xf32>
    %381 = arith.mulf %376, %379 : vector<8x64xf32>
    %382 = arith.addf %380, %381 : vector<8x64xf32>
    %383 = math.tanh %382 : vector<8x64xf32>
    %384 = arith.mulf %378, %383 : vector<8x64xf32>
    %c14 = arith.constant 14 : index
    %c0_75 = arith.constant 0 : index
    %c0_76 = arith.constant 0 : index
    %385 = vector.load %arg0[%c14, %c0_75, %c0_76] : memref<16x8x256xf32, #tpu.memory_space<vmem>>, vector<1x8x256xf32>
    %386 = vector.shape_cast %385 : vector<1x8x256xf32> to vector<8x256xf32>
    %cst_77 = arith.constant dense<0.000000e+00> : vector<8x256xf32>
    %387 = tpu.matmul %384, %0, %cst_77 {dimension_numbers = #tpu.dot_dimension_numbers<[1], [0], [0], [1], [0, 0, 1, 1], [], []>} : vector<8x64xf32>, vector<64x256xf32>, vector<8x256xf32> -> vector<8x256xf32>
    %388 = arith.addf %386, %387 : vector<8x256xf32>
    %389 = vector.extract_strided_slice %388 {offsets = [0, 0], sizes = [8, 128], strides = [1, 1]} : vector<8x256xf32> to vector<8x128xf32>
    %390 = arith.negf %389 : vector<8x128xf32>
    %391 = math.exp %390 : vector<8x128xf32>
    %cst_78 = arith.constant 1.000000e+00 : f32
    %392 = vector.broadcast %cst_78 : f32 to vector<8x128xf32>
    %393 = arith.addf %392, %391 : vector<8x128xf32>
    %394 = arith.divf %392, %393 : vector<8x128xf32>
    %395 = vector.extract_strided_slice %388 {offsets = [0, 128], sizes = [8, 128], strides = [1, 1]} : vector<8x256xf32> to vector<8x128xf32>
    %396 = arith.negf %395 : vector<8x128xf32>
    %397 = math.exp %396 : vector<8x128xf32>
    %cst_79 = arith.constant 1.000000e+00 : f32
    %398 = vector.broadcast %cst_79 : f32 to vector<8x128xf32>
    %399 = arith.addf %398, %397 : vector<8x128xf32>
    %400 = arith.divf %398, %399 : vector<8x128xf32>
    %401 = math.tanh %395 : vector<8x128xf32>
    %402 = arith.select %4, %400, %401 : vector<8x128xi1>, vector<8x128xf32>
    %403 = vector.extract_strided_slice %394 {offsets = [0, 0], sizes = [8, 64], strides = [1, 1]} : vector<8x128xf32> to vector<8x64xf32>
    %404 = vector.extract_strided_slice %394 {offsets = [0, 64], sizes = [8, 64], strides = [1, 1]} : vector<8x128xf32> to vector<8x64xf32>
    %405 = vector.extract_strided_slice %402 {offsets = [0, 0], sizes = [8, 64], strides = [1, 1]} : vector<8x128xf32> to vector<8x64xf32>
    %406 = vector.extract_strided_slice %402 {offsets = [0, 64], sizes = [8, 64], strides = [1, 1]} : vector<8x128xf32> to vector<8x64xf32>
    %407 = arith.mulf %404, %382 : vector<8x64xf32>
    %408 = arith.mulf %403, %406 : vector<8x64xf32>
    %409 = arith.addf %407, %408 : vector<8x64xf32>
    %410 = math.tanh %409 : vector<8x64xf32>
    %411 = arith.mulf %405, %410 : vector<8x64xf32>
    %c15 = arith.constant 15 : index
    %c0_80 = arith.constant 0 : index
    %c0_81 = arith.constant 0 : index
    %412 = vector.load %arg0[%c15, %c0_80, %c0_81] : memref<16x8x256xf32, #tpu.memory_space<vmem>>, vector<1x8x256xf32>
    %413 = vector.shape_cast %412 : vector<1x8x256xf32> to vector<8x256xf32>
    %cst_82 = arith.constant dense<0.000000e+00> : vector<8x256xf32>
    %414 = tpu.matmul %411, %0, %cst_82 {dimension_numbers = #tpu.dot_dimension_numbers<[1], [0], [0], [1], [0, 0, 1, 1], [], []>} : vector<8x64xf32>, vector<64x256xf32>, vector<8x256xf32> -> vector<8x256xf32>
    %415 = arith.addf %413, %414 : vector<8x256xf32>
    %416 = vector.extract_strided_slice %415 {offsets = [0, 0], sizes = [8, 128], strides = [1, 1]} : vector<8x256xf32> to vector<8x128xf32>
    %417 = arith.negf %416 : vector<8x128xf32>
    %418 = math.exp %417 : vector<8x128xf32>
    %cst_83 = arith.constant 1.000000e+00 : f32
    %419 = vector.broadcast %cst_83 : f32 to vector<8x128xf32>
    %420 = arith.addf %419, %418 : vector<8x128xf32>
    %421 = arith.divf %419, %420 : vector<8x128xf32>
    %422 = vector.extract_strided_slice %415 {offsets = [0, 128], sizes = [8, 128], strides = [1, 1]} : vector<8x256xf32> to vector<8x128xf32>
    %423 = arith.negf %422 : vector<8x128xf32>
    %424 = math.exp %423 : vector<8x128xf32>
    %cst_84 = arith.constant 1.000000e+00 : f32
    %425 = vector.broadcast %cst_84 : f32 to vector<8x128xf32>
    %426 = arith.addf %425, %424 : vector<8x128xf32>
    %427 = arith.divf %425, %426 : vector<8x128xf32>
    %428 = math.tanh %422 : vector<8x128xf32>
    %429 = arith.select %4, %427, %428 : vector<8x128xi1>, vector<8x128xf32>
    %430 = vector.extract_strided_slice %421 {offsets = [0, 0], sizes = [8, 64], strides = [1, 1]} : vector<8x128xf32> to vector<8x64xf32>
    %431 = vector.extract_strided_slice %421 {offsets = [0, 64], sizes = [8, 64], strides = [1, 1]} : vector<8x128xf32> to vector<8x64xf32>
    %432 = vector.extract_strided_slice %429 {offsets = [0, 0], sizes = [8, 64], strides = [1, 1]} : vector<8x128xf32> to vector<8x64xf32>
    %433 = vector.extract_strided_slice %429 {offsets = [0, 64], sizes = [8, 64], strides = [1, 1]} : vector<8x128xf32> to vector<8x64xf32>
    %434 = arith.mulf %431, %409 : vector<8x64xf32>
    %435 = arith.mulf %430, %433 : vector<8x64xf32>
    %436 = arith.addf %434, %435 : vector<8x64xf32>
    %437 = math.tanh %436 : vector<8x64xf32>
    %438 = arith.mulf %432, %437 : vector<8x64xf32>
    %439 = vector.broadcast %1 : vector<1x64xf32> to vector<8x64xf32>
    %440 = arith.mulf %438, %439 : vector<8x64xf32>
    %cst_85 = arith.constant dense<0.000000e+00> : vector<8xf32>
    %441 = vector.multi_reduction <add>, %440, %cst_85 [1] : vector<8x64xf32> to vector<8xf32>
    %442 = vector.shape_cast %441 : vector<8xf32> to vector<8x1xf32>
    %c0_86 = arith.constant 0 : index
    %c0_87 = arith.constant 0 : index
    %443 = memref.load %arg3[%c0_86, %c0_87] : memref<1x1xf32, #tpu.memory_space<smem>>
    %444 = vector.broadcast %443 : f32 to vector<8x1xf32>
    %445 = arith.addf %442, %444 : vector<8x1xf32>
    %c0_88 = arith.constant 0 : index
    %c0_89 = arith.constant 0 : index
    %446 = vector.load %arg4[%c0_88, %c0_89] : memref<8x1xf32, #tpu.memory_space<vmem>>, vector<8x1xf32>
    tpu.vector_store %arg4[%c0_88, %c0_89], %445 {strides = array<i32>} : memref<8x1xf32, #tpu.memory_space<vmem>>, vector<8x1xf32>,
    return
  }
}

</mosaic_0001>

<bundles_post_ra>
// kernel: tpu_custom_call.1
= control target key start
LH: loop header
LB: loop body
LE: loop exit
PB: predicated region body
PF: predicated region fallthrough
CT: control target
= control target key end

     0   :  { %10 = vsyncpa [#allocation4], 0  ;;  %s2721_s0 = inlined_call_operand.hbm [shape: f32[16,8,256], index: 0, kind: input, shape index: {}]   ;;  %s2722_s1 = inlined_call_operand.hbm [shape: f32[64,256], index: 1, kind: input, shape index: {}]   ;;  %s2723_s2 = inlined_call_operand.vmem [shape: f32[1,64], index: 2, kind: input, shape index: {}]   ;;  %s2724_s3 = inlined_call_operand.<no memory space> [shape: f32[1,1], index: 3, kind: input, shape index: {}]   ;;  %s2725_s4 = inlined_call_operand.vmem [shape: f32[8,1], index: 4, kind: output, shape index: {}]  }
   0x1   :  { %11 = vsyncpa [#allocation6], 0  ;;  %s2397_s15 = smov [#allocation3]   ;;  %s2349_s19 = scalar_lea.hbm %s2721_s0, 4096 }
   0x2   :  { %s17_s16 = sshll.u32 %s2397_s15, 4  ;;  %p2350_p0 = scmp.ne.s32.totalorder %s2721_s0, %s2349_s19  ;;  %s18_s16 = int_to_ptr.vmem [resolvable:$true] %s17_s16 }
   0x3   :  { %p2353_p1 = scmp.lt.u32.totalorder %s2349_s19, %s2721_s0 }
   0x5   :  { %p2355_p2 = pnand %p2353_p1, %p2350_p0 }
   0x7   :  { %2358 = shalt.err (!%p2355_p2)
}
   0x8   :  { %s2359_s24 = scalar_lea.vmem %s18_s16, 4096  ;;  %p2364_p4 = scmp.lt.s32.totalorder %s18_s16, %s18_s16 }
   0x9   :  { %p2360_p3 = scmp.ne.s32.totalorder %s18_s16, %s2359_s24  ;;  %p2365_p5 = scmp.lt.s32.totalorder %s2359_s24, %s2359_s24 }
   0xb   :  { %p2366_p6 = por %p2365_p5, %p2364_p4 }
   0xd   :  { %p2367_p7 = pnand %p2366_p6, %p2360_p3 }
   0xf   :  { %2370 = shalt.err (!%p2367_p7)
}
  0x10   :  { %s2398_s25 = smov 256   ;;  %s2399_s26 = smov 16  }
  0x11   :  { %23 = dma.hbm_to_vmem [thread:$0]  %s2721_s0, 4096, %s18_s16, [#allocation4], %s2398_s25, %s2398_s25, %s2399_s26  }
  0x12   :  { %s2400_s29 = smov [#allocation5]   ;;  %s2371_s7 = scalar_lea.hbm %s2722_s1, 2048 }
  0x13   :  { %s29_s30 = sshll.u32 %s2400_s29, 4  ;;  %p2372_p8 = scmp.ne.s32.totalorder %s2722_s1, %s2371_s7  ;;  %s30_s30 = int_to_ptr.vmem [resolvable:$true] %s29_s30 }
  0x14   :  { %p2375_p9 = scmp.lt.u32.totalorder %s2371_s7, %s2722_s1 }
  0x16   :  { %p2377_p10 = pnand %p2375_p9, %p2372_p8 }
  0x18   :  { %2380 = shalt.err (!%p2377_p10)
}
  0x19   :  { %s2381_s12 = scalar_lea.vmem %s30_s30, 2048  ;;  %p2386_p12 = scmp.lt.s32.totalorder %s30_s30, %s30_s30 }
  0x1a   :  { %p2382_p11 = scmp.ne.s32.totalorder %s30_s30, %s2381_s12  ;;  %p2387_p13 = scmp.lt.s32.totalorder %s2381_s12, %s2381_s12 }
  0x1c   :  { %p2388_p0 = por %p2387_p13, %p2386_p12 }
  0x1e   :  { %p2389_p1 = pnand %p2388_p0, %p2382_p11 }
  0x20   :  { %2392 = shalt.err (!%p2389_p1)
}
  0x21   :  { %35 = dma.hbm_to_vmem [thread:$0]  %s2722_s1, 2048, %s30_s30, [#allocation6], %s2398_s25, %s2398_s25, %s2399_s26  }
  0x22   :  { %2393 = dma.done.wait [#allocation4], 4096  }
  0x23   :  { %2394 = vsyncadd [#allocation4], 4294963200 }
  0x24   :  { %2395 = dma.done.wait [#allocation6], 2048  }
  0x25   :  { %2396 = vsyncadd [#allocation6], 4294965248  ;;  %v2401_v0 = vmov 0.0   ;;  %v47_v1 = vld [vmem:[#allocation5 + $0x8] sm:$0xff]  ;;  %v49_v2 = vld [vmem:[#allocation5 + $0x18] sm:$0xff]  ;;  %v63_v32 = vlaneseq  ;;  %s2402_s1 = smov 64  }
  0x26   :  { %136 = vmatprep.mubr.f32.mxu0 %v2401_v0  ;;  %246 = vmatprep.mubr.f32.mxu1 %v2401_v0  ;;  %v46_v3 = vld [vmem:[#allocation5] sm:$0xff]  ;;  %v2454_v4 = vpack.c.bf16 %v49_v2, %v47_v1  ;;  %v48_v5 = vld [vmem:[#allocation5 + $0x10] sm:$0xff]  ;;  %v51_v6 = vld [vmem:[#allocation5 + $0x28] sm:$0xff]  ;;  %vm68_vm1 = vcmask 523264   ;;  %vm1839_vm2 = vcmask 7168  }
  0x27   :  { %v53_v7 = vld [vmem:[#allocation5 + $0x38] sm:$0xff]  ;;  %v2456_v8 = vpack.c.bf16 %v48_v5, %v46_v3  ;;  %v50_v10 = vld [vmem:[#allocation5 + $0x20] sm:$0xff]  ;;  %v52_v11 = vld [vmem:[#allocation5 + $0x30] sm:$0xff]  ;;  %v2498_v33 = vand.u32 127, %v63_v32 }
  0x28   :  { %v2458_v9 = vpack.c.bf16 %v53_v7, %v51_v6  ;;  %v55_v12 = vld [vmem:[#allocation5 + $0x48] sm:$0xff]  ;;  %1896 = vmatprep.subr.bf16.mxu0 %v2454_v4  ;;  %v57_v13 = vld [vmem:[#allocation5 + $0x58] sm:$0xff]  ;;  %1912 = vmatprep.subr.bf16.mxu1 %v2454_v4  ;;  %v2463_v14 = vpack.c.bf16 %v52_v11, %v50_v10  ;;  %v54_v16 = vld [vmem:[#allocation5 + $0x40] sm:$0xff] }
  0x29   :  { %1898 = vmatpush1.bf16.msra.mxu0 %v2456_v8  ;;  %1914 = vmatpush1.bf16.msra.mxu1 %v2456_v8  ;;  %v2467_v15 = vpack.c.bf16 %v57_v13, %v55_v12  ;;  %v56_v17 = vld [vmem:[#allocation5 + $0x50] sm:$0xff]  ;;  %v59_v18 = vld [vmem:[#allocation5 + $0x68] sm:$0xff]  ;;  %v61_v19 = vld [vmem:[#allocation5 + $0x78] sm:$0xff]  ;;  %vm65_vm0 = vcmp.lt.s32.totalorder %v2498_v33, 64 }
  0x2a   :  { %1900 = vmatprep.subr.bf16.mxu0 %v2458_v9  ;;  %1916 = vmatprep.subr.bf16.mxu1 %v2458_v9  ;;  %v2471_v20 = vpack.c.bf16 %v56_v17, %v54_v16  ;;  %v2475_v21 = vpack.c.bf16 %v61_v19, %v59_v18  ;;  %v58_v22 = vld [vmem:[#allocation5 + $0x60] sm:$0xff]  ;;  %v60_v23 = vld [vmem:[#allocation5 + $0x70] sm:$0xff]  ;;  %v67_v25 = vld [vmem:[#allocation3 + $0x8] sm:$0xff] }
  0x2b   :  { %v2479_v24 = vpack.c.bf16 %v60_v23, %v58_v22  ;;  %v66_v37 = vld [vmem:[#allocation3] sm:$0xff]  ;;  %v178_v51 = vld [vmem:[#allocation3 + $0x18] sm:$0xff]  ;;  %v177_v61 = vld [vmem:[#allocation3 + $0x10] sm:$0xff] }
  0x2c   :  { %v288_v17 = vld [vmem:[#allocation3 + $0x28] sm:$0xff] }
  0x2d   :  { %1902 = vmatpush1.bf16.msra.mxu0 %v2463_v14  ;;  %1918 = vmatpush1.bf16.msra.mxu1 %v2463_v14 }
  0x2e   :  { %1904 = vmatprep.subr.bf16.mxu0 %v2467_v15  ;;  %1920 = vmatprep.subr.bf16.mxu1 %v2467_v15 }
  0x31   :  { %1906 = vmatpush1.bf16.msra.mxu0 %v2471_v20  ;;  %1922 = vmatpush1.bf16.msra.mxu1 %v2471_v20 }
  0x32   :  { %1908 = vmatprep.subr.bf16.mxu0 %v2475_v21  ;;  %1924 = vmatprep.subr.bf16.mxu1 %v2475_v21 }
  0x35   :  { %1910 = vmatpush1.bf16.msra.mxu0 %v2479_v24  ;;  %1926 = vmatpush1.bf16.msra.mxu1 %v2479_v24 }
  0x36   :  { %1928 = vmatprep.subr.bf16.mxu0 %v2454_v4  ;;  %1944 = vmatprep.subr.bf16.mxu1 %v2454_v4 }
  0x38   :  { %137 = vmatmul.mubr.f32.vlgmr.msra.gmra.mrb[0].mxu0 %v2401_v0 }
  0x39   :  { %1930 = vmatpush1.bf16.msra.mxu0 %v2456_v8  ;;  %356 = vmatprep.mubr.f32.mxu0 %v2401_v0 }
  0x3a   :  { %1932 = vmatprep.subr.bf16.mxu0 %v2458_v9 }
  0x3d   :  { %1934 = vmatpush1.bf16.msra.mxu0 %v2463_v14 }
  0x3e   :  { %1936 = vmatprep.subr.bf16.mxu0 %v2467_v15 }
  0x41   :  { %1938 = vmatpush1.bf16.msra.mxu0 %v2471_v20 }
  0x42   :  { %1940 = vmatprep.subr.bf16.mxu0 %v2475_v21 }
  0x45   :  { %1942 = vmatpush1.bf16.msra.mxu0 %v2479_v24 }
  0x46   :  { %1960 = vmatprep.subr.bf16.mxu0 %v2454_v4 }
 0x10b   :  { %v138_v26 = vpop.f32.mrb[0].mxu0 }
 0x10c   :  { %v140_v27 = vpop.f32.mrb[1].mxu0  ;;  %v143_v38 = vadd.f32 %v138_v26, %v66_v37 }
 0x10d   :  { %v144_v28 = vadd.f32 %v140_v27, %v67_v25 }
 0x10e   :  { %v1847_v39 = vmul.f32 -1.442695, %v143_v38 }
 0x10f   :  { %v1848_v29 = vmul.f32 -1.442695, %v144_v28 }
 0x111   :  { %2157 = vpow2.f32 %v1848_v29 }
 0x112   :  { %2159 = vtanh.f32 %v144_v28 }
 0x11b   :  { %v2158_v30 = vpop.eup %2157 }
 0x11c   :  { %v154_v31 = vadd.f32 1.0, %v2158_v30  ;;  %v2160_v34 = vpop.eup %2159  ;;  %v287_v30 = vld [vmem:[#allocation3 + $0x20] sm:$0xff] }
 0x11e   :  { %2161 = vrcp.f32 %v154_v31 }
 0x11f   :  { %2163 = vpow2.f32 %v1847_v39 }
 0x128   :  { %v2162_v35 = vpop.eup %2161 }
 0x129   :  { %v158_v36 = vsel %vm65_vm0, %v2162_v35, %v2160_v34  ;;  %v2164_v40 = vpop.eup %2163 }
 0x12a   :  { %161 = vrot.lane.b32.xlu0 %v158_v36, %s2402_s1  ;;  %v148_v41 = vadd.f32 1.0, %v2164_v40 }
 0x12c   :  { %2165 = vrcp.f32 %v148_v41 }
 0x136   :  { %v2166_v42 = vpop.eup %2165 }
 0x137   :  { %v159_v45 = vmul.f32 0.0, %v2166_v42 }
 0x19c   :  { %v162_v43 = vpop.permute.xlu0 %161 }
 0x19d   :  { %v164_v44 = vmul.f32 %v2166_v42, %v162_v43 }
 0x19f   :  { %166 = vrot.lane.b32.xlu0 %v164_v44, %s2402_s1 }
 0x211   :  { %v167_v46 = vpop.permute.xlu0 %166 }
 0x212   :  { %v169_v47 = vadd.f32 %v167_v46, %v159_v45  ;;  %v398_v45 = vld [vmem:[#allocation3 + $0x38] sm:$0xff] }
 0x214   :  { %2167 = vtanh.f32 %v169_v47 }
 0x21e   :  { %v2168_v48 = vpop.eup %2167 }
 0x21f   :  { %172 = vrot.lane.b32.xlu1 %v2168_v48, %s2402_s1 }
 0x291   :  { %v173_v49 = vpop.permute.xlu1 %172 }
 0x292   :  { %v175_v50 = vmul.f32 %v173_v49, %v158_v36 }
 0x294   :  { %1849 = vmatmul.mubr.msk.f32.vlgmr.msra.gmra.mrb[0].mxu1 %vm68_vm1, %v175_v50 }
 0x295   :  { %1946 = vmatpush1.bf16.msra.mxu1 %v2456_v8  ;;  %466 = vmatprep.mubr.f32.mxu1 %v2401_v0 }
 0x296   :  { %1948 = vmatprep.subr.bf16.mxu1 %v2458_v9 }
 0x299   :  { %1950 = vmatpush1.bf16.msra.mxu1 %v2463_v14 }
 0x29a   :  { %1952 = vmatprep.subr.bf16.mxu1 %v2467_v15 }
 0x29d   :  { %1954 = vmatpush1.bf16.msra.mxu1 %v2471_v20 }
 0x29e   :  { %1956 = vmatprep.subr.bf16.mxu1 %v2475_v21 }
 0x2a1   :  { %1958 = vmatpush1.bf16.msra.mxu1 %v2479_v24 }
 0x2a2   :  { %1976 = vmatprep.subr.bf16.mxu1 %v2454_v4 }
 0x367   :  { %v248_v52 = vpop.f32.mrb[0].mxu1 }
 0x368   :  { %v250_v53 = vpop.f32.mrb[1].mxu1  ;;  %v253_v62 = vadd.f32 %v248_v52, %v177_v61 }
 0x369   :  { %v254_v54 = vadd.f32 %v250_v53, %v178_v51 }
 0x36a   :  { %v1850_v63 = vmul.f32 -1.442695, %v253_v62 }
 0x36b   :  { %v1851_v55 = vmul.f32 -1.442695, %v254_v54 }
 0x36d   :  { %2169 = vpow2.f32 %v1851_v55  ;;  %v397_v55 = vld [vmem:[#allocation3 + $0x30] sm:$0xff] }
 0x36e   :  { %2171 = vtanh.f32 %v254_v54 }
 0x377   :  { %v2170_v56 = vpop.eup %2169 }
 0x378   :  { %v264_v57 = vadd.f32 1.0, %v2170_v56  ;;  %v2172_v58 = vpop.eup %2171 }
 0x37a   :  { %2173 = vrcp.f32 %v264_v57 }
 0x37b   :  { %2175 = vpow2.f32 %v1850_v63 }
 0x384   :  { %v2174_v59 = vpop.eup %2173 }
 0x385   :  { %v268_v60 = vsel %vm65_vm0, %v2174_v59, %v2172_v58  ;;  %v2176_v1 = vpop.eup %2175 }
 0x386   :  { %271 = vrot.lane.b32.xlu1 %v268_v60, %s2402_s1  ;;  %v258_v2 = vadd.f32 1.0, %v2176_v1 }
 0x388   :  { %2177 = vrcp.f32 %v258_v2 }
 0x392   :  { %v2178_v3 = vpop.eup %2177 }
 0x393   :  { %v269_v7 = vmul.f32 %v2178_v3, %v169_v47 }
 0x3f8   :  { %v272_v5 = vpop.permute.xlu1 %271 }
 0x3f9   :  { %v274_v6 = vmul.f32 %v2178_v3, %v272_v5 }
 0x3fb   :  { %276 = vrot.lane.b32.xlu0 %v274_v6, %s2402_s1 }
 0x46d   :  { %v277_v10 = vpop.permute.xlu0 %276 }
 0x46e   :  { %v279_v11 = vadd.f32 %v277_v10, %v269_v7  ;;  %v508_v7 = vld [vmem:[#allocation3 + $0x48] sm:$0xff] }
 0x470   :  { %2179 = vtanh.f32 %v279_v11 }
 0x47a   :  { %v2180_v12 = vpop.eup %2179 }
 0x47b   :  { %282 = vrot.lane.b32.xlu1 %v2180_v12, %s2402_s1 }
 0x4ed   :  { %v283_v13 = vpop.permute.xlu1 %282 }
 0x4ee   :  { %v285_v16 = vmul.f32 %v283_v13, %v268_v60 }
 0x4f0   :  { %1852 = vmatmul.mubr.msk.f32.vlgmr.msra.gmra.mrb[2].mxu0 %vm68_vm1, %v285_v16 }
 0x4f1   :  { %1962 = vmatpush1.bf16.msra.mxu0 %v2456_v8  ;;  %576 = vmatprep.mubr.f32.mxu0 %v2401_v0 }
 0x4f2   :  { %1964 = vmatprep.subr.bf16.mxu0 %v2458_v9 }
 0x4f5   :  { %1966 = vmatpush1.bf16.msra.mxu0 %v2463_v14 }
 0x4f6   :  { %1968 = vmatprep.subr.bf16.mxu0 %v2467_v15 }
 0x4f9   :  { %1970 = vmatpush1.bf16.msra.mxu0 %v2471_v20 }
 0x4fa   :  { %1972 = vmatprep.subr.bf16.mxu0 %v2475_v21 }
 0x4fd   :  { %1974 = vmatpush1.bf16.msra.mxu0 %v2479_v24 }
 0x4fe   :  { %1992 = vmatprep.subr.bf16.mxu0 %v2454_v4 }
 0x5c3   :  { %v358_v18 = vpop.f32.mrb[2].mxu0 }
 0x5c4   :  { %v360_v19 = vpop.f32.mrb[3].mxu0  ;;  %v363_v31 = vadd.f32 %v358_v18, %v287_v30 }
 0x5c5   :  { %v364_v22 = vadd.f32 %v360_v19, %v288_v17 }
 0x5c6   :  { %v1853_v32 = vmul.f32 -1.442695, %v363_v31 }
 0x5c7   :  { %v1854_v23 = vmul.f32 -1.442695, %v364_v22 }
 0x5c9   :  { %2181 = vpow2.f32 %v1854_v23  ;;  %v507_v23 = vld [vmem:[#allocation3 + $0x40] sm:$0xff] }
 0x5ca   :  { %2183 = vtanh.f32 %v364_v22 }
 0x5d3   :  { %v2182_v25 = vpop.eup %2181 }
 0x5d4   :  { %v374_v26 = vadd.f32 1.0, %v2182_v25  ;;  %v2184_v27 = vpop.eup %2183 }
 0x5d6   :  { %2185 = vrcp.f32 %v374_v26 }
 0x5d7   :  { %2187 = vpow2.f32 %v1853_v32 }
 0x5e0   :  { %v2186_v28 = vpop.eup %2185 }
 0x5e1   :  { %v378_v29 = vsel %vm65_vm0, %v2186_v28, %v2184_v27  ;;  %v2188_v34 = vpop.eup %2187 }
 0x5e2   :  { %381 = vrot.lane.b32.xlu0 %v378_v29, %s2402_s1  ;;  %v368_v35 = vadd.f32 1.0, %v2188_v34 }
 0x5e4   :  { %2189 = vrcp.f32 %v368_v35 }
 0x5ee   :  { %v2190_v36 = vpop.eup %2189 }
 0x5ef   :  { %v379_v39 = vmul.f32 %v2190_v36, %v279_v11 }
 0x654   :  { %v382_v37 = vpop.permute.xlu0 %381 }
 0x655   :  { %v384_v38 = vmul.f32 %v2190_v36, %v382_v37 }
 0x657   :  { %386 = vrot.lane.b32.xlu1 %v384_v38, %s2402_s1 }
 0x6c9   :  { %v387_v40 = vpop.permute.xlu1 %386 }
 0x6ca   :  { %v389_v41 = vadd.f32 %v387_v40, %v379_v39  ;;  %v618_v39 = vld [vmem:[#allocation3 + $0x58] sm:$0xff] }
 0x6cc   :  { %2191 = vtanh.f32 %v389_v41 }
 0x6d6   :  { %v2192_v42 = vpop.eup %2191 }
 0x6d7   :  { %392 = vrot.lane.b32.xlu0 %v2192_v42, %s2402_s1 }
 0x749   :  { %v393_v43 = vpop.permute.xlu0 %392 }
 0x74a   :  { %v395_v44 = vmul.f32 %v393_v43, %v378_v29 }
 0x74c   :  { %1855 = vmatmul.mubr.msk.f32.vlgmr.msra.gmra.mrb[2].mxu1 %vm68_vm1, %v395_v44 }
 0x74d   :  { %1978 = vmatpush1.bf16.msra.mxu1 %v2456_v8  ;;  %686 = vmatprep.mubr.f32.mxu1 %v2401_v0 }
 0x74e   :  { %1980 = vmatprep.subr.bf16.mxu1 %v2458_v9 }
 0x751   :  { %1982 = vmatpush1.bf16.msra.mxu1 %v2463_v14 }
 0x752   :  { %1984 = vmatprep.subr.bf16.mxu1 %v2467_v15 }
 0x755   :  { %1986 = vmatpush1.bf16.msra.mxu1 %v2471_v20 }
 0x756   :  { %1988 = vmatprep.subr.bf16.mxu1 %v2475_v21 }
 0x759   :  { %1990 = vmatpush1.bf16.msra.mxu1 %v2479_v24 }
 0x75a   :  { %2008 = vmatprep.subr.bf16.mxu1 %v2454_v4 }
 0x81f   :  { %v468_v46 = vpop.f32.mrb[2].mxu1 }
 0x820   :  { %v470_v47 = vpop.f32.mrb[3].mxu1  ;;  %v473_v56 = vadd.f32 %v468_v46, %v397_v55 }
 0x821   :  { %v474_v48 = vadd.f32 %v470_v47, %v398_v45 }
 0x822   :  { %v1856_v57 = vmul.f32 -1.442695, %v473_v56 }
 0x823   :  { %v1857_v49 = vmul.f32 -1.442695, %v474_v48 }
 0x825   :  { %2193 = vpow2.f32 %v1857_v49  ;;  %v617_v49 = vld [vmem:[#allocation3 + $0x50] sm:$0xff] }
 0x826   :  { %2195 = vtanh.f32 %v474_v48 }
 0x82f   :  { %v2194_v50 = vpop.eup %2193 }
 0x830   :  { %v484_v51 = vadd.f32 1.0, %v2194_v50  ;;  %v2196_v52 = vpop.eup %2195 }
 0x832   :  { %2197 = vrcp.f32 %v484_v51 }
 0x833   :  { %2199 = vpow2.f32 %v1856_v57 }
 0x83c   :  { %v2198_v53 = vpop.eup %2197 }
 0x83d   :  { %v488_v54 = vsel %vm65_vm0, %v2198_v53, %v2196_v52  ;;  %v2200_v58 = vpop.eup %2199 }
 0x83e   :  { %491 = vrot.lane.b32.xlu1 %v488_v54, %s2402_s1  ;;  %v478_v59 = vadd.f32 1.0, %v2200_v58 }
 0x840   :  { %2201 = vrcp.f32 %v478_v59 }
 0x84a   :  { %v2202_v60 = vpop.eup %2201 }
 0x84b   :  { %v489_v63 = vmul.f32 %v2202_v60, %v389_v41 }
 0x8b0   :  { %v492_v61 = vpop.permute.xlu1 %491 }
 0x8b1   :  { %v494_v62 = vmul.f32 %v2202_v60, %v492_v61 }
 0x8b3   :  { %496 = vrot.lane.b32.xlu0 %v494_v62, %s2402_s1 }
 0x925   :  { %v497_v1 = vpop.permute.xlu0 %496 }
 0x926   :  { %v499_v2 = vadd.f32 %v497_v1, %v489_v63  ;;  %v728_v63 = vld [vmem:[#allocation3 + $0x68] sm:$0xff] }
 0x928   :  { %2203 = vtanh.f32 %v499_v2 }
 0x932   :  { %v2204_v3 = vpop.eup %2203 }
 0x933   :  { %502 = vrot.lane.b32.xlu1 %v2204_v3, %s2402_s1 }
 0x9a5   :  { %v503_v5 = vpop.permute.xlu1 %502 }
 0x9a6   :  { %v505_v6 = vmul.f32 %v503_v5, %v488_v54 }
 0x9a8   :  { %1858 = vmatmul.mubr.msk.f32.vlgmr.msra.gmra.mrb[4].mxu0 %vm68_vm1, %v505_v6 }
 0x9a9   :  { %1994 = vmatpush1.bf16.msra.mxu0 %v2456_v8  ;;  %796 = vmatprep.mubr.f32.mxu0 %v2401_v0 }
 0x9aa   :  { %1996 = vmatprep.subr.bf16.mxu0 %v2458_v9 }
 0x9ad   :  { %1998 = vmatpush1.bf16.msra.mxu0 %v2463_v14 }
 0x9ae   :  { %2000 = vmatprep.subr.bf16.mxu0 %v2467_v15 }
 0x9b1   :  { %2002 = vmatpush1.bf16.msra.mxu0 %v2471_v20 }
 0x9b2   :  { %2004 = vmatprep.subr.bf16.mxu0 %v2475_v21 }
 0x9b5   :  { %2006 = vmatpush1.bf16.msra.mxu0 %v2479_v24 }
 0x9b6   :  { %2024 = vmatprep.subr.bf16.mxu0 %v2454_v4 }
 0xa7b   :  { %v578_v10 = vpop.f32.mrb[4].mxu0 }
 0xa7c   :  { %v580_v11 = vpop.f32.mrb[5].mxu0  ;;  %v583_v25 = vadd.f32 %v578_v10, %v507_v23 }
 0xa7d   :  { %v584_v12 = vadd.f32 %v580_v11, %v508_v7 }
 0xa7e   :  { %v1859_v26 = vmul.f32 -1.442695, %v583_v25 }
 0xa7f   :  { %v1860_v13 = vmul.f32 -1.442695, %v584_v12 }
 0xa81   :  { %2205 = vpow2.f32 %v1860_v13  ;;  %v727_v13 = vld [vmem:[#allocation3 + $0x60] sm:$0xff] }
 0xa82   :  { %2207 = vtanh.f32 %v584_v12 }
 0xa8b   :  { %v2206_v16 = vpop.eup %2205 }
 0xa8c   :  { %v594_v17 = vadd.f32 1.0, %v2206_v16  ;;  %v2208_v18 = vpop.eup %2207 }
 0xa8e   :  { %2209 = vrcp.f32 %v594_v17 }
 0xa8f   :  { %2211 = vpow2.f32 %v1859_v26 }
 0xa98   :  { %v2210_v19 = vpop.eup %2209 }
 0xa99   :  { %v598_v22 = vsel %vm65_vm0, %v2210_v19, %v2208_v18  ;;  %v2212_v27 = vpop.eup %2211 }
 0xa9a   :  { %601 = vrot.lane.b32.xlu0 %v598_v22, %s2402_s1  ;;  %v588_v28 = vadd.f32 1.0, %v2212_v27 }
 0xa9c   :  { %2213 = vrcp.f32 %v588_v28 }
 0xaa6   :  { %v2214_v29 = vpop.eup %2213 }
 0xaa7   :  { %v599_v32 = vmul.f32 %v2214_v29, %v499_v2 }
 0xb0c   :  { %v602_v30 = vpop.permute.xlu0 %601 }
 0xb0d   :  { %v604_v31 = vmul.f32 %v2214_v29, %v602_v30 }
 0xb0f   :  { %606 = vrot.lane.b32.xlu1 %v604_v31, %s2402_s1 }
 0xb81   :  { %v607_v34 = vpop.permute.xlu1 %606 }
 0xb82   :  { %v609_v35 = vadd.f32 %v607_v34, %v599_v32  ;;  %v838_v32 = vld [vmem:[#allocation3 + $0x78] sm:$0xff] }
 0xb84   :  { %2215 = vtanh.f32 %v609_v35 }
 0xb8e   :  { %v2216_v36 = vpop.eup %2215 }
 0xb8f   :  { %612 = vrot.lane.b32.xlu0 %v2216_v36, %s2402_s1 }
 0xc01   :  { %v613_v37 = vpop.permute.xlu0 %612 }
 0xc02   :  { %v615_v38 = vmul.f32 %v613_v37, %v598_v22 }
 0xc04   :  { %1861 = vmatmul.mubr.msk.f32.vlgmr.msra.gmra.mrb[4].mxu1 %vm68_vm1, %v615_v38 }
 0xc05   :  { %2010 = vmatpush1.bf16.msra.mxu1 %v2456_v8  ;;  %906 = vmatprep.mubr.f32.mxu1 %v2401_v0 }
 0xc06   :  { %2012 = vmatprep.subr.bf16.mxu1 %v2458_v9 }
 0xc09   :  { %2014 = vmatpush1.bf16.msra.mxu1 %v2463_v14 }
 0xc0a   :  { %2016 = vmatprep.subr.bf16.mxu1 %v2467_v15 }
 0xc0d   :  { %2018 = vmatpush1.bf16.msra.mxu1 %v2471_v20 }
 0xc0e   :  { %2020 = vmatprep.subr.bf16.mxu1 %v2475_v21 }
 0xc11   :  { %2022 = vmatpush1.bf16.msra.mxu1 %v2479_v24 }
 0xc12   :  { %2040 = vmatprep.subr.bf16.mxu1 %v2454_v4 }
 0xcd7   :  { %v688_v40 = vpop.f32.mrb[4].mxu1 }
 0xcd8   :  { %v690_v41 = vpop.f32.mrb[5].mxu1  ;;  %v693_v50 = vadd.f32 %v688_v40, %v617_v49 }
 0xcd9   :  { %v694_v42 = vadd.f32 %v690_v41, %v618_v39 }
 0xcda   :  { %v1862_v51 = vmul.f32 -1.442695, %v693_v50 }
 0xcdb   :  { %v1863_v43 = vmul.f32 -1.442695, %v694_v42 }
 0xcdd   :  { %2217 = vpow2.f32 %v1863_v43  ;;  %v837_v43 = vld [vmem:[#allocation3 + $0x70] sm:$0xff] }
 0xcde   :  { %2219 = vtanh.f32 %v694_v42 }
 0xce7   :  { %v2218_v44 = vpop.eup %2217 }
 0xce8   :  { %v704_v45 = vadd.f32 1.0, %v2218_v44  ;;  %v2220_v46 = vpop.eup %2219 }
 0xcea   :  { %2221 = vrcp.f32 %v704_v45 }
 0xceb   :  { %2223 = vpow2.f32 %v1862_v51 }
 0xcf4   :  { %v2222_v47 = vpop.eup %2221 }
 0xcf5   :  { %v708_v48 = vsel %vm65_vm0, %v2222_v47, %v2220_v46  ;;  %v2224_v52 = vpop.eup %2223 }
 0xcf6   :  { %711 = vrot.lane.b32.xlu1 %v708_v48, %s2402_s1  ;;  %v698_v53 = vadd.f32 1.0, %v2224_v52 }
 0xcf8   :  { %2225 = vrcp.f32 %v698_v53 }
 0xd02   :  { %v2226_v54 = vpop.eup %2225 }
 0xd03   :  { %v709_v57 = vmul.f32 %v2226_v54, %v609_v35 }
 0xd68   :  { %v712_v55 = vpop.permute.xlu1 %711 }
 0xd69   :  { %v714_v56 = vmul.f32 %v2226_v54, %v712_v55 }
 0xd6b   :  { %716 = vrot.lane.b32.xlu0 %v714_v56, %s2402_s1 }
 0xddd   :  { %v717_v58 = vpop.permute.xlu0 %716 }
 0xdde   :  { %v719_v59 = vadd.f32 %v717_v58, %v709_v57  ;;  %v948_v57 = vld [vmem:[#allocation3 + $0x88] sm:$0xff] }
 0xde0   :  { %2227 = vtanh.f32 %v719_v59 }
 0xdea   :  { %v2228_v60 = vpop.eup %2227 }
 0xdeb   :  { %722 = vrot.lane.b32.xlu1 %v2228_v60, %s2402_s1 }
 0xe5d   :  { %v723_v61 = vpop.permute.xlu1 %722 }
 0xe5e   :  { %v725_v62 = vmul.f32 %v723_v61, %v708_v48 }
 0xe60   :  { %1864 = vmatmul.mubr.msk.f32.vlgmr.msra.gmra.mrb[6].mxu0 %vm68_vm1, %v725_v62 }
 0xe61   :  { %2026 = vmatpush1.bf16.msra.mxu0 %v2456_v8  ;;  %1016 = vmatprep.mubr.f32.mxu0 %v2401_v0 }
 0xe62   :  { %2028 = vmatprep.subr.bf16.mxu0 %v2458_v9 }
 0xe65   :  { %2030 = vmatpush1.bf16.msra.mxu0 %v2463_v14 }
 0xe66   :  { %2032 = vmatprep.subr.bf16.mxu0 %v2467_v15 }
 0xe69   :  { %2034 = vmatpush1.bf16.msra.mxu0 %v2471_v20 }
 0xe6a   :  { %2036 = vmatprep.subr.bf16.mxu0 %v2475_v21 }
 0xe6d   :  { %2038 = vmatpush1.bf16.msra.mxu0 %v2479_v24 }
 0xe6e   :  { %2056 = vmatprep.subr.bf16.mxu0 %v2454_v4 }
 0xf33   :  { %v798_v1 = vpop.f32.mrb[6].mxu0 }
 0xf34   :  { %v800_v2 = vpop.f32.mrb[7].mxu0  ;;  %v803_v16 = vadd.f32 %v798_v1, %v727_v13 }
 0xf35   :  { %v804_v3 = vadd.f32 %v800_v2, %v728_v63 }
 0xf36   :  { %v1865_v17 = vmul.f32 -1.442695, %v803_v16 }
 0xf37   :  { %v1866_v5 = vmul.f32 -1.442695, %v804_v3 }
 0xf39   :  { %2229 = vpow2.f32 %v1866_v5  ;;  %v947_v5 = vld [vmem:[#allocation3 + $0x80] sm:$0xff] }
 0xf3a   :  { %2231 = vtanh.f32 %v804_v3 }
 0xf43   :  { %v2230_v6 = vpop.eup %2229 }
 0xf44   :  { %v814_v7 = vadd.f32 1.0, %v2230_v6  ;;  %v2232_v10 = vpop.eup %2231 }
 0xf46   :  { %2233 = vrcp.f32 %v814_v7 }
 0xf47   :  { %2235 = vpow2.f32 %v1865_v17 }
 0xf50   :  { %v2234_v11 = vpop.eup %2233 }
 0xf51   :  { %v818_v12 = vsel %vm65_vm0, %v2234_v11, %v2232_v10  ;;  %v2236_v18 = vpop.eup %2235 }
 0xf52   :  { %821 = vrot.lane.b32.xlu0 %v818_v12, %s2402_s1  ;;  %v808_v19 = vadd.f32 1.0, %v2236_v18 }
 0xf54   :  { %2237 = vrcp.f32 %v808_v19 }
 0xf5e   :  { %v2238_v22 = vpop.eup %2237 }
 0xf5f   :  { %v819_v26 = vmul.f32 %v2238_v22, %v719_v59 }
 0xfc4   :  { %v822_v23 = vpop.permute.xlu0 %821 }
 0xfc5   :  { %v824_v25 = vmul.f32 %v2238_v22, %v822_v23 }
 0xfc7   :  { %826 = vrot.lane.b32.xlu1 %v824_v25, %s2402_s1 }
0x1039   :  { %v827_v27 = vpop.permute.xlu1 %826 }
0x103a   :  { %v829_v28 = vadd.f32 %v827_v27, %v819_v26  ;;  %v1058_v26 = vld [vmem:[#allocation3 + $0x98] sm:$0xff] }
0x103c   :  { %2239 = vtanh.f32 %v829_v28 }
0x1046   :  { %v2240_v29 = vpop.eup %2239 }
0x1047   :  { %832 = vrot.lane.b32.xlu0 %v2240_v29, %s2402_s1 }
0x10b9   :  { %v833_v30 = vpop.permute.xlu0 %832 }
0x10ba   :  { %v835_v31 = vmul.f32 %v833_v30, %v818_v12 }
0x10bc   :  { %1867 = vmatmul.mubr.msk.f32.vlgmr.msra.gmra.mrb[6].mxu1 %vm68_vm1, %v835_v31 }
0x10bd   :  { %2042 = vmatpush1.bf16.msra.mxu1 %v2456_v8  ;;  %1126 = vmatprep.mubr.f32.mxu1 %v2401_v0 }
0x10be   :  { %2044 = vmatprep.subr.bf16.mxu1 %v2458_v9 }
0x10c1   :  { %2046 = vmatpush1.bf16.msra.mxu1 %v2463_v14 }
0x10c2   :  { %2048 = vmatprep.subr.bf16.mxu1 %v2467_v15 }
0x10c5   :  { %2050 = vmatpush1.bf16.msra.mxu1 %v2471_v20 }
0x10c6   :  { %2052 = vmatprep.subr.bf16.mxu1 %v2475_v21 }
0x10c9   :  { %2054 = vmatpush1.bf16.msra.mxu1 %v2479_v24 }
0x10ca   :  { %2072 = vmatprep.subr.bf16.mxu1 %v2454_v4 }
0x118f   :  { %v908_v34 = vpop.f32.mrb[6].mxu1 }
0x1190   :  { %v910_v35 = vpop.f32.mrb[7].mxu1  ;;  %v913_v44 = vadd.f32 %v908_v34, %v837_v43 }
0x1191   :  { %v914_v36 = vadd.f32 %v910_v35, %v838_v32 }
0x1192   :  { %v1868_v45 = vmul.f32 -1.442695, %v913_v44 }
0x1193   :  { %v1869_v37 = vmul.f32 -1.442695, %v914_v36 }
0x1195   :  { %2241 = vpow2.f32 %v1869_v37  ;;  %v1057_v37 = vld [vmem:[#allocation3 + $0x90] sm:$0xff] }
0x1196   :  { %2243 = vtanh.f32 %v914_v36 }
0x119f   :  { %v2242_v38 = vpop.eup %2241 }
0x11a0   :  { %v924_v39 = vadd.f32 1.0, %v2242_v38  ;;  %v2244_v40 = vpop.eup %2243 }
0x11a2   :  { %2245 = vrcp.f32 %v924_v39 }
0x11a3   :  { %2247 = vpow2.f32 %v1868_v45 }
0x11ac   :  { %v2246_v41 = vpop.eup %2245 }
0x11ad   :  { %v928_v42 = vsel %vm65_vm0, %v2246_v41, %v2244_v40  ;;  %v2248_v46 = vpop.eup %2247 }
0x11ae   :  { %931 = vrot.lane.b32.xlu1 %v928_v42, %s2402_s1  ;;  %v918_v47 = vadd.f32 1.0, %v2248_v46 }
0x11b0   :  { %2249 = vrcp.f32 %v918_v47 }
0x11ba   :  { %v2250_v48 = vpop.eup %2249 }
0x11bb   :  { %v929_v51 = vmul.f32 %v2250_v48, %v829_v28 }
0x1220   :  { %v932_v49 = vpop.permute.xlu1 %931 }
0x1221   :  { %v934_v50 = vmul.f32 %v2250_v48, %v932_v49 }
0x1223   :  { %936 = vrot.lane.b32.xlu0 %v934_v50, %s2402_s1 }
0x1295   :  { %v937_v52 = vpop.permute.xlu0 %936 }
0x1296   :  { %v939_v53 = vadd.f32 %v937_v52, %v929_v51  ;;  %v1168_v51 = vld [vmem:[#allocation3 + $0xa8] sm:$0xff] }
0x1298   :  { %2251 = vtanh.f32 %v939_v53 }
0x12a2   :  { %v2252_v54 = vpop.eup %2251 }
0x12a3   :  { %942 = vrot.lane.b32.xlu1 %v2252_v54, %s2402_s1 }
0x1315   :  { %v943_v55 = vpop.permute.xlu1 %942 }
0x1316   :  { %v945_v56 = vmul.f32 %v943_v55, %v928_v42 }
0x1318   :  { %1870 = vmatmul.mubr.msk.f32.vlgmr.msra.gmra.mrb[8].mxu0 %vm68_vm1, %v945_v56 }
0x1319   :  { %2058 = vmatpush1.bf16.msra.mxu0 %v2456_v8  ;;  %1236 = vmatprep.mubr.f32.mxu0 %v2401_v0 }
0x131a   :  { %2060 = vmatprep.subr.bf16.mxu0 %v2458_v9 }
0x131d   :  { %2062 = vmatpush1.bf16.msra.mxu0 %v2463_v14 }
0x131e   :  { %2064 = vmatprep.subr.bf16.mxu0 %v2467_v15 }
0x1321   :  { %2066 = vmatpush1.bf16.msra.mxu0 %v2471_v20 }
0x1322   :  { %2068 = vmatprep.subr.bf16.mxu0 %v2475_v21 }
0x1325   :  { %2070 = vmatpush1.bf16.msra.mxu0 %v2479_v24 }
0x1326   :  { %2088 = vmatprep.subr.bf16.mxu0 %v2454_v4 }
0x13eb   :  { %v1018_v58 = vpop.f32.mrb[8].mxu0 }
0x13ec   :  { %v1020_v59 = vpop.f32.mrb[9].mxu0  ;;  %v1023_v6 = vadd.f32 %v1018_v58, %v947_v5 }
0x13ed   :  { %v1024_v60 = vadd.f32 %v1020_v59, %v948_v57 }
0x13ee   :  { %v1871_v7 = vmul.f32 -1.442695, %v1023_v6 }
0x13ef   :  { %v1872_v61 = vmul.f32 -1.442695, %v1024_v60 }
0x13f1   :  { %2253 = vpow2.f32 %v1872_v61  ;;  %v1167_v61 = vld [vmem:[#allocation3 + $0xa0] sm:$0xff] }
0x13f2   :  { %2255 = vtanh.f32 %v1024_v60 }
0x13fb   :  { %v2254_v62 = vpop.eup %2253 }
0x13fc   :  { %v1034_v63 = vadd.f32 1.0, %v2254_v62  ;;  %v2256_v1 = vpop.eup %2255 }
0x13fe   :  { %2257 = vrcp.f32 %v1034_v63 }
0x13ff   :  { %2259 = vpow2.f32 %v1871_v7 }
0x1408   :  { %v2258_v2 = vpop.eup %2257 }
0x1409   :  { %v1038_v3 = vsel %vm65_vm0, %v2258_v2, %v2256_v1  ;;  %v2260_v10 = vpop.eup %2259 }
0x140a   :  { %1041 = vrot.lane.b32.xlu0 %v1038_v3, %s2402_s1  ;;  %v1028_v11 = vadd.f32 1.0, %v2260_v10 }
0x140c   :  { %2261 = vrcp.f32 %v1028_v11 }
0x1416   :  { %v2262_v12 = vpop.eup %2261 }
0x1417   :  { %v1039_v17 = vmul.f32 %v2262_v12, %v939_v53 }
0x147c   :  { %v1042_v13 = vpop.permute.xlu0 %1041 }
0x147d   :  { %v1044_v16 = vmul.f32 %v2262_v12, %v1042_v13 }
0x147f   :  { %1046 = vrot.lane.b32.xlu1 %v1044_v16, %s2402_s1 }
0x14f1   :  { %v1047_v18 = vpop.permute.xlu1 %1046 }
0x14f2   :  { %v1049_v19 = vadd.f32 %v1047_v18, %v1039_v17  ;;  %v1278_v17 = vld [vmem:[#allocation3 + $0xb8] sm:$0xff] }
0x14f4   :  { %2263 = vtanh.f32 %v1049_v19 }
0x14fe   :  { %v2264_v22 = vpop.eup %2263 }
0x14ff   :  { %1052 = vrot.lane.b32.xlu0 %v2264_v22, %s2402_s1 }
0x1571   :  { %v1053_v23 = vpop.permute.xlu0 %1052 }
0x1572   :  { %v1055_v25 = vmul.f32 %v1053_v23, %v1038_v3 }
0x1574   :  { %1873 = vmatmul.mubr.msk.f32.vlgmr.msra.gmra.mrb[8].mxu1 %vm68_vm1, %v1055_v25 }
0x1575   :  { %2074 = vmatpush1.bf16.msra.mxu1 %v2456_v8  ;;  %1346 = vmatprep.mubr.f32.mxu1 %v2401_v0 }
0x1576   :  { %2076 = vmatprep.subr.bf16.mxu1 %v2458_v9 }
0x1579   :  { %2078 = vmatpush1.bf16.msra.mxu1 %v2463_v14 }
0x157a   :  { %2080 = vmatprep.subr.bf16.mxu1 %v2467_v15 }
0x157d   :  { %2082 = vmatpush1.bf16.msra.mxu1 %v2471_v20 }
0x157e   :  { %2084 = vmatprep.subr.bf16.mxu1 %v2475_v21 }
0x1581   :  { %2086 = vmatpush1.bf16.msra.mxu1 %v2479_v24 }
0x1582   :  { %2104 = vmatprep.subr.bf16.mxu1 %v2454_v4 }
0x1647   :  { %v1128_v27 = vpop.f32.mrb[8].mxu1 }
0x1648   :  { %v1130_v28 = vpop.f32.mrb[9].mxu1  ;;  %v1133_v38 = vadd.f32 %v1128_v27, %v1057_v37 }
0x1649   :  { %v1134_v29 = vadd.f32 %v1130_v28, %v1058_v26 }
0x164a   :  { %v1874_v39 = vmul.f32 -1.442695, %v1133_v38 }
0x164b   :  { %v1875_v30 = vmul.f32 -1.442695, %v1134_v29 }
0x164d   :  { %2265 = vpow2.f32 %v1875_v30  ;;  %v1277_v30 = vld [vmem:[#allocation3 + $0xb0] sm:$0xff] }
0x164e   :  { %2267 = vtanh.f32 %v1134_v29 }
0x1657   :  { %v2266_v31 = vpop.eup %2265 }
0x1658   :  { %v1144_v32 = vadd.f32 1.0, %v2266_v31  ;;  %v2268_v34 = vpop.eup %2267 }
0x165a   :  { %2269 = vrcp.f32 %v1144_v32 }
0x165b   :  { %2271 = vpow2.f32 %v1874_v39 }
0x1664   :  { %v2270_v35 = vpop.eup %2269 }
0x1665   :  { %v1148_v36 = vsel %vm65_vm0, %v2270_v35, %v2268_v34  ;;  %v2272_v40 = vpop.eup %2271 }
0x1666   :  { %1151 = vrot.lane.b32.xlu1 %v1148_v36, %s2402_s1  ;;  %v1138_v41 = vadd.f32 1.0, %v2272_v40 }
0x1668   :  { %2273 = vrcp.f32 %v1138_v41 }
0x1672   :  { %v2274_v42 = vpop.eup %2273 }
0x1673   :  { %v1149_v45 = vmul.f32 %v2274_v42, %v1049_v19 }
0x16d8   :  { %v1152_v43 = vpop.permute.xlu1 %1151 }
0x16d9   :  { %v1154_v44 = vmul.f32 %v2274_v42, %v1152_v43 }
0x16db   :  { %1156 = vrot.lane.b32.xlu0 %v1154_v44, %s2402_s1  ;;  %v1388_v44 = vld [vmem:[#allocation3 + $0xc8] sm:$0xff] }
0x174d   :  { %v1157_v46 = vpop.permute.xlu0 %1156 }
0x174e   :  { %v1159_v47 = vadd.f32 %v1157_v46, %v1149_v45 }
0x1750   :  { %2275 = vtanh.f32 %v1159_v47 }
0x175a   :  { %v2276_v48 = vpop.eup %2275 }
0x175b   :  { %1162 = vrot.lane.b32.xlu1 %v2276_v48, %s2402_s1 }
0x17cd   :  { %v1163_v49 = vpop.permute.xlu1 %1162 }
0x17ce   :  { %v1165_v50 = vmul.f32 %v1163_v49, %v1148_v36 }
0x17d0   :  { %1876 = vmatmul.mubr.msk.f32.vlgmr.msra.gmra.mrb[10].mxu0 %vm68_vm1, %v1165_v50 }
0x17d1   :  { %2090 = vmatpush1.bf16.msra.mxu0 %v2456_v8  ;;  %1456 = vmatprep.mubr.f32.mxu0 %v2401_v0 }
0x17d2   :  { %2092 = vmatprep.subr.bf16.mxu0 %v2458_v9 }
0x17d5   :  { %2094 = vmatpush1.bf16.msra.mxu0 %v2463_v14 }
0x17d6   :  { %2096 = vmatprep.subr.bf16.mxu0 %v2467_v15 }
0x17d9   :  { %2098 = vmatpush1.bf16.msra.mxu0 %v2471_v20 }
0x17da   :  { %2100 = vmatprep.subr.bf16.mxu0 %v2475_v21 }
0x17dd   :  { %2102 = vmatpush1.bf16.msra.mxu0 %v2479_v24 }
0x17de   :  { %2120 = vmatprep.subr.bf16.mxu0 %v2454_v4 }
0x18a3   :  { %v1238_v52 = vpop.f32.mrb[10].mxu0 }
0x18a4   :  { %v1240_v53 = vpop.f32.mrb[11].mxu0  ;;  %v1243_v62 = vadd.f32 %v1238_v52, %v1167_v61 }
0x18a5   :  { %v1244_v54 = vadd.f32 %v1240_v53, %v1168_v51 }
0x18a6   :  { %v1877_v63 = vmul.f32 -1.442695, %v1243_v62 }
0x18a7   :  { %v1878_v55 = vmul.f32 -1.442695, %v1244_v54 }
0x18a9   :  { %2277 = vpow2.f32 %v1878_v55 }
0x18aa   :  { %2279 = vtanh.f32 %v1244_v54  ;;  %v1387_v54 = vld [vmem:[#allocation3 + $0xc0] sm:$0xff] }
0x18b3   :  { %v2278_v56 = vpop.eup %2277 }
0x18b4   :  { %v1254_v57 = vadd.f32 1.0, %v2278_v56  ;;  %v2280_v58 = vpop.eup %2279 }
0x18b6   :  { %2281 = vrcp.f32 %v1254_v57 }
0x18b7   :  { %2283 = vpow2.f32 %v1877_v63 }
0x18c0   :  { %v2282_v59 = vpop.eup %2281 }
0x18c1   :  { %v1258_v60 = vsel %vm65_vm0, %v2282_v59, %v2280_v58  ;;  %v2284_v1 = vpop.eup %2283 }
0x18c2   :  { %1261 = vrot.lane.b32.xlu0 %v1258_v60, %s2402_s1  ;;  %v1248_v2 = vadd.f32 1.0, %v2284_v1 }
0x18c4   :  { %2285 = vrcp.f32 %v1248_v2 }
0x18ce   :  { %v2286_v3 = vpop.eup %2285 }
0x18cf   :  { %v1259_v7 = vmul.f32 %v2286_v3, %v1159_v47 }
0x1934   :  { %v1262_v5 = vpop.permute.xlu0 %1261 }
0x1935   :  { %v1264_v6 = vmul.f32 %v2286_v3, %v1262_v5 }
0x1937   :  { %1266 = vrot.lane.b32.xlu1 %v1264_v6, %s2402_s1  ;;  %v1498_v6 = vld [vmem:[#allocation3 + $0xd8] sm:$0xff] }
0x19a9   :  { %v1267_v10 = vpop.permute.xlu1 %1266 }
0x19aa   :  { %v1269_v11 = vadd.f32 %v1267_v10, %v1259_v7 }
0x19ac   :  { %2287 = vtanh.f32 %v1269_v11 }
0x19b6   :  { %v2288_v12 = vpop.eup %2287 }
0x19b7   :  { %1272 = vrot.lane.b32.xlu0 %v2288_v12, %s2402_s1 }
0x1a29   :  { %v1273_v13 = vpop.permute.xlu0 %1272 }
0x1a2a   :  { %v1275_v16 = vmul.f32 %v1273_v13, %v1258_v60 }
0x1a2c   :  { %1879 = vmatmul.mubr.msk.f32.vlgmr.msra.gmra.mrb[10].mxu1 %vm68_vm1, %v1275_v16 }
0x1a2d   :  { %2106 = vmatpush1.bf16.msra.mxu1 %v2456_v8  ;;  %1566 = vmatprep.mubr.f32.mxu1 %v2401_v0 }
0x1a2e   :  { %2108 = vmatprep.subr.bf16.mxu1 %v2458_v9 }
0x1a31   :  { %2110 = vmatpush1.bf16.msra.mxu1 %v2463_v14 }
0x1a32   :  { %2112 = vmatprep.subr.bf16.mxu1 %v2467_v15 }
0x1a35   :  { %2114 = vmatpush1.bf16.msra.mxu1 %v2471_v20 }
0x1a36   :  { %2116 = vmatprep.subr.bf16.mxu1 %v2475_v21 }
0x1a39   :  { %2118 = vmatpush1.bf16.msra.mxu1 %v2479_v24 }
0x1a3a   :  { %2136 = vmatprep.subr.bf16.mxu1 %v2454_v4 }
0x1aff   :  { %v1348_v18 = vpop.f32.mrb[10].mxu1 }
0x1b00   :  { %v1350_v19 = vpop.f32.mrb[11].mxu1  ;;  %v1353_v31 = vadd.f32 %v1348_v18, %v1277_v30 }
0x1b01   :  { %v1354_v22 = vadd.f32 %v1350_v19, %v1278_v17 }
0x1b02   :  { %v1880_v4 = vmul.f32 -1.442695, %v1353_v31 }
0x1b03   :  { %v1881_v23 = vmul.f32 -1.442695, %v1354_v22 }
0x1b05   :  { %2289 = vpow2.f32 %v1881_v23 }
0x1b06   :  { %2291 = vtanh.f32 %v1354_v22 }
0x1b0f   :  { %v2290_v25 = vpop.eup %2289 }
0x1b10   :  { %v1364_v26 = vadd.f32 1.0, %v2290_v25  ;;  %v2292_v27 = vpop.eup %2291 }
0x1b12   :  { %2293 = vrcp.f32 %v1364_v26 }
0x1b13   :  { %2295 = vpow2.f32 %v1880_v4 }
0x1b1c   :  { %v2294_v28 = vpop.eup %2293 }
0x1b1d   :  { %v1368_v29 = vsel %vm65_vm0, %v2294_v28, %v2292_v27  ;;  %v2296_v32 = vpop.eup %2295 }
0x1b1e   :  { %1371 = vrot.lane.b32.xlu1 %v1368_v29, %s2402_s1  ;;  %v1358_v34 = vadd.f32 1.0, %v2296_v32 }
0x1b20   :  { %2297 = vrcp.f32 %v1358_v34 }
0x1b2a   :  { %v2298_v35 = vpop.eup %2297 }
0x1b2b   :  { %v1369_v38 = vmul.f32 %v2298_v35, %v1269_v11 }
0x1b90   :  { %v1372_v36 = vpop.permute.xlu1 %1371 }
0x1b91   :  { %v1374_v37 = vmul.f32 %v2298_v35, %v1372_v36 }
0x1b93   :  { %1376 = vrot.lane.b32.xlu0 %v1374_v37, %s2402_s1 }
0x1c05   :  { %v1377_v39 = vpop.permute.xlu0 %1376 }
0x1c06   :  { %v1379_v40 = vadd.f32 %v1377_v39, %v1369_v38  ;;  %v1607_v39 = vld [vmem:[#allocation3 + $0xe0] sm:$0xff] }
0x1c08   :  { %2299 = vtanh.f32 %v1379_v40 }
0x1c12   :  { %v2300_v41 = vpop.eup %2299 }
0x1c13   :  { %1382 = vrot.lane.b32.xlu1 %v2300_v41, %s2402_s1 }
0x1c85   :  { %v1383_v42 = vpop.permute.xlu1 %1382 }
0x1c86   :  { %v1385_v43 = vmul.f32 %v1383_v42, %v1368_v29  ;;  %v1608_v29 = vld [vmem:[#allocation3 + $0xe8] sm:$0xff] }
0x1c88   :  { %1882 = vmatmul.mubr.msk.f32.vlgmr.msra.gmra.mrb[12].mxu0 %vm68_vm1, %v1385_v43 }
0x1c89   :  { %2122 = vmatpush1.bf16.msra.mxu0 %v2456_v8  ;;  %1676 = vmatprep.mubr.f32.mxu0 %v2401_v0 }
0x1c8a   :  { %2124 = vmatprep.subr.bf16.mxu0 %v2458_v9 }
0x1c8d   :  { %2126 = vmatpush1.bf16.msra.mxu0 %v2463_v14 }
0x1c8e   :  { %2128 = vmatprep.subr.bf16.mxu0 %v2467_v15 }
0x1c91   :  { %2130 = vmatpush1.bf16.msra.mxu0 %v2471_v20 }
0x1c92   :  { %2132 = vmatprep.subr.bf16.mxu0 %v2475_v21 }
0x1c95   :  { %2134 = vmatpush1.bf16.msra.mxu0 %v2479_v24 }
0x1d5b   :  { %v1458_v45 = vpop.f32.mrb[12].mxu0 }
0x1d5c   :  { %v1460_v46 = vpop.f32.mrb[13].mxu0  ;;  %v1463_v55 = vadd.f32 %v1458_v45, %v1387_v54 }
0x1d5d   :  { %v1464_v47 = vadd.f32 %v1460_v46, %v1388_v44 }
0x1d5e   :  { %v1883_v56 = vmul.f32 -1.442695, %v1463_v55 }
0x1d5f   :  { %v1884_v48 = vmul.f32 -1.442695, %v1464_v47 }
0x1d61   :  { %2301 = vpow2.f32 %v1884_v48 }
0x1d62   :  { %2303 = vtanh.f32 %v1464_v47 }
0x1d6b   :  { %v2302_v49 = vpop.eup %2301 }
0x1d6c   :  { %v1474_v50 = vadd.f32 1.0, %v2302_v49  ;;  %v2304_v51 = vpop.eup %2303 }
0x1d6e   :  { %2305 = vrcp.f32 %v1474_v50 }
0x1d6f   :  { %2307 = vpow2.f32 %v1883_v56 }
0x1d78   :  { %v2306_v52 = vpop.eup %2305 }
0x1d79   :  { %v1478_v53 = vsel %vm65_vm0, %v2306_v52, %v2304_v51  ;;  %v2308_v57 = vpop.eup %2307 }
0x1d7a   :  { %1481 = vrot.lane.b32.xlu0 %v1478_v53, %s2402_s1  ;;  %v1468_v58 = vadd.f32 1.0, %v2308_v57 }
0x1d7c   :  { %2309 = vrcp.f32 %v1468_v58 }
0x1d86   :  { %v2310_v59 = vpop.eup %2309 }
0x1d87   :  { %v1479_v62 = vmul.f32 %v2310_v59, %v1379_v40 }
0x1dec   :  { %v1482_v60 = vpop.permute.xlu0 %1481 }
0x1ded   :  { %v1484_v61 = vmul.f32 %v2310_v59, %v1482_v60 }
0x1def   :  { %1486 = vrot.lane.b32.xlu1 %v1484_v61, %s2402_s1 }
0x1e61   :  { %v1487_v63 = vpop.permute.xlu1 %1486 }
0x1e62   :  { %v1489_v1 = vadd.f32 %v1487_v63, %v1479_v62  ;;  %v1717_v63 = vld [vmem:[#allocation3 + $0xf0] sm:$0xff] }
0x1e64   :  { %2311 = vtanh.f32 %v1489_v1 }
0x1e6e   :  { %v2312_v2 = vpop.eup %2311 }
0x1e6f   :  { %1492 = vrot.lane.b32.xlu0 %v2312_v2, %s2402_s1 }
0x1ee1   :  { %v1493_v3 = vpop.permute.xlu0 %1492 }
0x1ee2   :  { %v1495_v5 = vmul.f32 %v1493_v3, %v1478_v53  ;;  %v1718_v53 = vld [vmem:[#allocation3 + $0xf8] sm:$0xff] }
0x1ee4   :  { %1885 = vmatmul.mubr.msk.f32.vlgmr.msra.gmra.mrb[12].mxu1 %vm68_vm1, %v1495_v5 }
0x1ee5   :  { %2138 = vmatpush1.bf16.msra.mxu1 %v2456_v8  ;;  %1786 = vmatprep.mubr.f32.mxu1 %v2401_v0 }
0x1ee6   :  { %2140 = vmatprep.subr.bf16.mxu1 %v2458_v9 }
0x1ee9   :  { %2142 = vmatpush1.bf16.msra.mxu1 %v2463_v14 }
0x1eea   :  { %2144 = vmatprep.subr.bf16.mxu1 %v2467_v15 }
0x1eed   :  { %2146 = vmatpush1.bf16.msra.mxu1 %v2471_v20  ;;  %v1497_v20 = vld [vmem:[#allocation3 + $0xd0] sm:$0xff] }
0x1eee   :  { %2148 = vmatprep.subr.bf16.mxu1 %v2475_v21 }
0x1ef1   :  { %2150 = vmatpush1.bf16.msra.mxu1 %v2479_v24 }
0x1fb7   :  { %v1568_v7 = vpop.f32.mrb[12].mxu1 }
0x1fb8   :  { %v1570_v10 = vpop.f32.mrb[13].mxu1  ;;  %v1573_v21 = vadd.f32 %v1568_v7, %v1497_v20 }
0x1fb9   :  { %v1574_v11 = vadd.f32 %v1570_v10, %v1498_v6 }
0x1fba   :  { %v1886_v24 = vmul.f32 -1.442695, %v1573_v21  ;;  %v1837_v21 = vstv %s2724_s3 }
0x1fbb   :  { %v1887_v12 = vmul.f32 -1.442695, %v1574_v11 }
0x1fbd   :  { %2313 = vpow2.f32 %v1887_v12 }
0x1fbe   :  { %2315 = vtanh.f32 %v1574_v11 }
0x1fc7   :  { %v2314_v8 = vpop.eup %2313 }
0x1fc8   :  { %v1584_v0 = vadd.f32 1.0, %v2314_v8  ;;  %v2316_v9 = vpop.eup %2315 }
0x1fca   :  { %2317 = vrcp.f32 %v1584_v0 }
0x1fcb   :  { %2319 = vpow2.f32 %v1886_v24 }
0x1fd4   :  { %v2318_v14 = vpop.eup %2317 }
0x1fd5   :  { %v1588_v15 = vsel %vm65_vm0, %v2318_v14, %v2316_v9  ;;  %v2320_v13 = vpop.eup %2319  ;;  %v1894_v9 = vld [vmem:[%s2723_s2] ss:$0 sm:$0xff] }
0x1fd6   :  { %1591 = vrot.lane.b32.xlu1 %v1588_v15, %s2402_s1  ;;  %v1578_v16 = vadd.f32 1.0, %v2320_v13 }
0x1fd8   :  { %2321 = vrcp.f32 %v1578_v16 }
0x1fe2   :  { %v2322_v17 = vpop.eup %2321 }
0x1fe3   :  { %v1589_v22 = vmul.f32 %v2322_v17, %v1489_v1 }
0x2048   :  { %v1592_v18 = vpop.permute.xlu1 %1591 }
0x2049   :  { %v1594_v19 = vmul.f32 %v2322_v17, %v1592_v18 }
0x204b   :  { %1596 = vrot.lane.b32.xlu0 %v1594_v19, %s2402_s1 }
0x20bd   :  { %v1597_v23 = vpop.permute.xlu0 %1596 }
0x20be   :  { %v1599_v25 = vadd.f32 %v1597_v23, %v1589_v22 }
0x20c0   :  { %2323 = vtanh.f32 %v1599_v25 }
0x20ca   :  { %v2324_v26 = vpop.eup %2323 }
0x20cb   :  { %1602 = vrot.lane.b32.xlu1 %v2324_v26, %s2402_s1 }
0x213d   :  { %v1603_v27 = vpop.permute.xlu1 %1602 }
0x213e   :  { %v1605_v28 = vmul.f32 %v1603_v27, %v1588_v15 }
0x2140   :  { %1888 = vmatmul.mubr.msk.f32.vlgmr.msra.gmra.mrb[14].mxu0 %vm68_vm1, %v1605_v28 }
0x2213   :  { %v1678_v30 = vpop.f32.mrb[14].mxu0 }
0x2214   :  { %v1680_v31 = vpop.f32.mrb[15].mxu0  ;;  %v1683_v40 = vadd.f32 %v1678_v30, %v1607_v39 }
0x2215   :  { %v1684_v4 = vadd.f32 %v1680_v31, %v1608_v29 }
0x2216   :  { %v1889_v41 = vmul.f32 -1.442695, %v1683_v40 }
0x2217   :  { %v1890_v32 = vmul.f32 -1.442695, %v1684_v4 }
0x2219   :  { %2325 = vpow2.f32 %v1890_v32 }
0x221a   :  { %2327 = vtanh.f32 %v1684_v4 }
0x2223   :  { %v2326_v34 = vpop.eup %2325 }
0x2224   :  { %v1694_v35 = vadd.f32 1.0, %v2326_v34  ;;  %v2328_v36 = vpop.eup %2327 }
0x2226   :  { %2329 = vrcp.f32 %v1694_v35 }
0x2227   :  { %2331 = vpow2.f32 %v1889_v41 }
0x2230   :  { %v2330_v37 = vpop.eup %2329 }
0x2231   :  { %v1698_v38 = vsel %vm65_vm0, %v2330_v37, %v2328_v36  ;;  %v2332_v42 = vpop.eup %2331 }
0x2232   :  { %1701 = vrot.lane.b32.xlu0 %v1698_v38, %s2402_s1  ;;  %v1688_v43 = vadd.f32 1.0, %v2332_v42 }
0x2234   :  { %2333 = vrcp.f32 %v1688_v43 }
0x223e   :  { %v2334_v44 = vpop.eup %2333 }
0x223f   :  { %v1699_v47 = vmul.f32 %v2334_v44, %v1599_v25 }
0x22a4   :  { %v1702_v45 = vpop.permute.xlu0 %1701 }
0x22a5   :  { %v1704_v46 = vmul.f32 %v2334_v44, %v1702_v45 }
0x22a7   :  { %1706 = vrot.lane.b32.xlu1 %v1704_v46, %s2402_s1 }
0x2319   :  { %v1707_v48 = vpop.permute.xlu1 %1706 }
0x231a   :  { %v1709_v49 = vadd.f32 %v1707_v48, %v1699_v47 }
0x231c   :  { %2335 = vtanh.f32 %v1709_v49 }
0x2326   :  { %v2336_v50 = vpop.eup %2335 }
0x2327   :  { %1712 = vrot.lane.b32.xlu0 %v2336_v50, %s2402_s1 }
0x2399   :  { %v1713_v51 = vpop.permute.xlu0 %1712 }
0x239a   :  { %v1715_v52 = vmul.f32 %v1713_v51, %v1698_v38 }
0x239c   :  { %1891 = vmatmul.mubr.msk.f32.vlgmr.msra.gmra.mrb[14].mxu1 %vm68_vm1, %v1715_v52 }
0x246f   :  { %v1788_v54 = vpop.f32.mrb[14].mxu1 }
0x2470   :  { %v1790_v55 = vpop.f32.mrb[15].mxu1  ;;  %v1793_v1 = vadd.f32 %v1788_v54, %v1717_v63 }
0x2471   :  { %v1794_v56 = vadd.f32 %v1790_v55, %v1718_v53 }
0x2472   :  { %v1892_v2 = vmul.f32 -1.442695, %v1793_v1 }
0x2473   :  { %v1893_v57 = vmul.f32 -1.442695, %v1794_v56 }
0x2475   :  { %2337 = vpow2.f32 %v1893_v57 }
0x2476   :  { %2339 = vtanh.f32 %v1794_v56 }
0x247f   :  { %v2338_v58 = vpop.eup %2337 }
0x2480   :  { %v1804_v59 = vadd.f32 1.0, %v2338_v58  ;;  %v2340_v60 = vpop.eup %2339 }
0x2482   :  { %2341 = vrcp.f32 %v1804_v59 }
0x2483   :  { %2343 = vpow2.f32 %v1892_v2 }
0x248c   :  { %v2342_v61 = vpop.eup %2341 }
0x248d   :  { %v1808_v62 = vsel %vm65_vm0, %v2342_v61, %v2340_v60  ;;  %v2344_v3 = vpop.eup %2343 }
0x248e   :  { %1811 = vrot.lane.b32.xlu1 %v1808_v62, %s2402_s1  ;;  %v1798_v5 = vadd.f32 1.0, %v2344_v3 }
0x2490   :  { %2345 = vrcp.f32 %v1798_v5 }
0x249a   :  { %v2346_v6 = vpop.eup %2345 }
0x249b   :  { %v1809_v11 = vmul.f32 %v2346_v6, %v1709_v49 }
0x2500   :  { %v1812_v7 = vpop.permute.xlu1 %1811 }
0x2501   :  { %v1814_v10 = vmul.f32 %v2346_v6, %v1812_v7 }
0x2503   :  { %1816 = vrot.lane.b32.xlu0 %v1814_v10, %s2402_s1 }
0x2575   :  { %v1817_v12 = vpop.permute.xlu0 %1816 }
0x2576   :  { %v1819_v8 = vadd.f32 %v1817_v12, %v1809_v11 }
0x2578   :  { %2347 = vtanh.f32 %v1819_v8 }
0x2582   :  { %v2348_v33 = vpop.eup %2347 }
0x2583   :  { %1822 = vrot.lane.b32.xlu1 %v2348_v33, %s2402_s1 }
0x25f5   :  { %v1823_v0 = vpop.permute.xlu1 %1822 }
0x25f6   :  { %v1825_v14 = vmul.f32 %v1823_v0, %v1808_v62 }
0x25f8   :  { %v1832_v15 = vmul.f32 %v1894_v9, %v1825_v14 }
0x25fa   :  { %v1833_v20 = vsel %vm68_vm1, %v1832_v15, 0.0 }
0x25fb   :  { %1834 = vadd.xlane.f32.xlu0 %v1833_v20 }
0x2688   :  { %v1835_v24 = vpop.xlane.xlu0 %1834 }
0x2689   :  { %v1838_v13 = vadd.f32 %v1837_v21, %v1835_v24 }
0x268b   :  { %1840 = vst.msk [vmem:[%s2725_s4] sm:$0xff] %vm1839_vm2, %v1838_v13 }
0x268c   :  { %1845 = vsyncpa [#allocation4], 1 }
0x268d   :  { %1846 = vsyncpa [#allocation6], 1 }

</bundles_post_ra>
